<compile_context>
chip_gen: v7x
topology: tpu7x:2x2x1
jax: 0.10.0
libtpu: 0.0.40
codegen_flags: <defaults>
</compile_context>

<pallas_src>
import math

import jax
import jax.numpy as jnp
from jax.experimental import pallas as pl
from jax.experimental.pallas import tpu as pltpu

LANE = 128
_MIB = 1024 * 1024


def _round_up(n, m):
    return (n + m - 1) // m * m


# ---------------------------------------------------------------------------
# Pallas kernels
# ---------------------------------------------------------------------------

def _mm_bn_relu_kernel(x_ref, w_ref, s_ref, b_ref, o_ref):
    """Y = relu((X @ W) * scale + shift)."""
    y = jnp.dot(x_ref[...], w_ref[...], preferred_element_type=jnp.float32)
    y = y * s_ref[...] + b_ref[...]
    o_ref[...] = jnp.maximum(y, 0.0).astype(o_ref.dtype)


def _mm_bn_relu_pool2_kernel(x0_ref, x1_ref, w_ref, s_ref, b_ref, o_ref):
    """Fused conv + BN + ReLU + (avg_pool(1,2) + max_pool(1,2)).

    x0/x1 hold the im2col rows of adjacent (even/odd) time steps, so the
    (1,2) pooling is just an elementwise reduction over the two dot results.
    """
    w = w_ref[...]
    s = s_ref[...]
    b = b_ref[...]
    y0 = jnp.maximum(
        jnp.dot(x0_ref[...], w, preferred_element_type=jnp.float32) * s + b, 0.0)
    y1 = jnp.maximum(
        jnp.dot(x1_ref[...], w, preferred_element_type=jnp.float32) * s + b, 0.0)
    o_ref[...] = ((y0 + y1) * 0.5 + jnp.maximum(y0, y1)).astype(o_ref.dtype)


# ---------------------------------------------------------------------------
# Tile / VMEM selection and pallas_call wrappers
# ---------------------------------------------------------------------------

def _tile_and_vmem(M, K, Np, n_x, out_itemsize):
    """Pick an M tile and a VMEM limit that fit all three TPU generations."""
    if M >= 1024:
        tile = 512                                   # ~85% of HBM roofline
    else:
        # Small problems: aim for >= 2 grid steps so both v7x cores get work.
        tile = min(_round_up(max(M // 2, 1), 8), _round_up(M, 8))

    def est(t):
        return (n_x * 2 * t * K * 2                  # X tile(s), bf16, double-buffered
                + 2 * K * Np * 2                     # weight, bf16
                + 4 * Np * 4                         # BN scale/shift
                + 2 * t * Np * out_itemsize)         # output tile, double-buffered

    while tile > 64 and est(tile) > 40 * _MIB:       # keep under v7x's 64 MiB VMEM
        tile //= 2
    tile = max(8, (tile // 8) * 8)
    vmem = int(min(max(est(tile) + 8 * _MIB, 32 * _MIB), 56 * _MIB))
    return tile, vmem


def matmul_bn_relu(x, w_p, s_p, b_p, out_dtype=jnp.bfloat16):
    """relu((x @ w_p) * s_p + b_p); x (M,K) bf16, w_p (K,Np) bf16, out (M,Np)."""
    M, K = x.shape
    Np = w_p.shape[1]
    tile_m, vmem = _tile_and_vmem(M, K, Np, 1, jnp.dtype(out_dtype).itemsize)
    Mp = _round_up(M, tile_m)
    if Mp != M:
        x = jnp.pad(x, ((0, Mp - M), (0, 0)))
    out = pl.pallas_call(
        _mm_bn_relu_kernel,
        out_shape=jax.ShapeDtypeStruct((Mp, Np), out_dtype),
        grid=(Mp // tile_m,),
        in_specs=[
            pl.BlockSpec((tile_m, K), lambda i: (i, 0)),   # X tile
            pl.BlockSpec((K, Np), lambda i: (0, 0)),       # W (resident)
            pl.BlockSpec((1, Np), lambda i: (0, 0)),       # BN scale
            pl.BlockSpec((1, Np), lambda i: (0, 0)),       # BN shift
        ],
        out_specs=pl.BlockSpec((tile_m, Np), lambda i: (i, 0)),
        compiler_params=pltpu.CompilerParams(
            dimension_semantics=("parallel",), vmem_limit_bytes=vmem),
    )(x, w_p, s_p, b_p)
    return out[:M]


def matmul_bn_relu_pool2(x0, x1, w_p, s_p, b_p, out_dtype=jnp.bfloat16):
    """Fused conv2 + BN + ReLU + (avg+max) pool over the x0/x1 row pair."""
    M, K = x0.shape
    Np = w_p.shape[1]
    tile_m, vmem = _tile_and_vmem(M, K, Np, 2, jnp.dtype(out_dtype).itemsize)
    Mp = _round_up(M, tile_m)
    if Mp != M:
        pad = ((0, Mp - M), (0, 0))
        x0 = jnp.pad(x0, pad)
        x1 = jnp.pad(x1, pad)
    out = pl.pallas_call(
        _mm_bn_relu_pool2_kernel,
        out_shape=jax.ShapeDtypeStruct((Mp, Np), out_dtype),
        grid=(Mp // tile_m,),
        in_specs=[
            pl.BlockSpec((tile_m, K), lambda i: (i, 0)),   # even-time patches
            pl.BlockSpec((tile_m, K), lambda i: (i, 0)),   # odd-time patches
            pl.BlockSpec((K, Np), lambda i: (0, 0)),
            pl.BlockSpec((1, Np), lambda i: (0, 0)),
            pl.BlockSpec((1, Np), lambda i: (0, 0)),
        ],
        out_specs=pl.BlockSpec((tile_m, Np), lambda i: (i, 0)),
        compiler_params=pltpu.CompilerParams(
            dimension_semantics=("parallel",), vmem_limit_bytes=vmem),
    )(x0, x1, w_p, s_p, b_p)
    return out[:M]


# ---------------------------------------------------------------------------
# Wrapper-side layout plumbing (XLA): im2col, weight repack, BN folding
# ---------------------------------------------------------------------------

def im2col_3x3(x_nhwc, c_valid):
    """(B,H,W,C>=c_valid) -> (B,H,W,9*c_valid) bf16 patches (3x3, pad 1, stride 1).

    The valid-channel slice lives here so lane-padded activations never need a
    standalone de-padding copy, and the patches are written to HBM in bf16.
    """
    B, H, W, _ = x_nhwc.shape
    x = x_nhwc[..., :c_valid].astype(jnp.bfloat16)
    xp = jnp.pad(x, ((0, 0), (1, 1), (1, 1), (0, 0)))
    blocks = [xp[:, dy:dy + H, dx:dx + W, :]
              for dy in range(3) for dx in range(3)]
    return jnp.concatenate(blocks, axis=-1)


def conv_w_to_mat(w):
    """PyTorch conv weight (Cout, Cin, 3, 3) -> matmul weight (9*Cin, Cout)."""
    cout, cin = w.shape[0], w.shape[1]
    return jnp.transpose(w, (2, 3, 1, 0)).reshape(9 * cin, cout)


def bn_fold(gamma, beta, mean, var, eps=1e-5):
    """Eval-mode BatchNorm folded into per-channel scale/shift."""
    scale = gamma / jnp.sqrt(var + eps)
    shift = beta - mean * scale
    return scale, shift


def prepare_params(params):
    """One-time repack: matmul layout, lane padding to 128, bf16 cast, folded BN."""
    def prep(w_mat, bn):
        K, N = w_mat.shape
        Np = _round_up(N, LANE)
        w_p = jnp.zeros((K, Np), jnp.float32).at[:, :N].set(w_mat).astype(jnp.bfloat16)
        scale, shift = bn_fold(*bn)
        s_p = jnp.zeros((1, Np), jnp.float32).at[:, :N].set(scale[None, :])
        b_p = jnp.zeros((1, Np), jnp.float32).at[:, :N].set(shift[None, :])
        return {'w': w_p, 's': s_p, 'b': b_p, 'n': int(N)}

    return {
        'conv1': prep(conv_w_to_mat(params['conv1']), params['bn1']),
        'conv2': prep(conv_w_to_mat(params['conv2']), params['bn2']),
        'conv3': prep(conv_w_to_mat(params['conv3']), params['bn3']),
        'conv4': prep(conv_w_to_mat(params['conv4']), params['bn4']),
        'out': prep(params['out_w'].T, params['out_bn']),
    }


# ---------------------------------------------------------------------------
# ConvStack forward (eval mode)
# ---------------------------------------------------------------------------

def conv_stack_forward(x, prep):
    """x: (B, in_channels, freq_bins, time_steps) NCHW -> (B, time//2, output_size).

    # TODO(synk): training-mode dropout / batch-statistics BN not implemented;
    # this is the deterministic eval-mode forward (dropout == identity).
    """
    B, Cin, F, T = x.shape
    T2 = T // 2
    y = jnp.transpose(x, (0, 2, 3, 1))                                  # NHWC f32

    # conv1 + bn1 + relu
    p = prep['conv1']
    patches = im2col_3x3(y, Cin).reshape(B * F * T, -1)
    y = matmul_bn_relu(patches, p['w'], p['s'], p['b']).reshape(B, F, T, -1)

    # conv2 + bn2 + relu, fused with avg_pool(1,2) + max_pool(1,2) over time
    p = prep['conv2']
    patches = im2col_3x3(y, prep['conv1']['n'])[:, :, :2 * T2, :]
    pe = patches[:, :, 0::2, :].reshape(B * F * T2, -1)
    po = patches[:, :, 1::2, :].reshape(B * F * T2, -1)
    y = matmul_bn_relu_pool2(pe, po, p['w'], p['s'], p['b']).reshape(B, F, T2, -1)

    # conv3 + bn3 + relu
    p = prep['conv3']
    patches = im2col_3x3(y, prep['conv2']['n']).reshape(B * F * T2, -1)
    y = matmul_bn_relu(patches, p['w'], p['s'], p['b']).reshape(B, F, T2, -1)

    # conv4 + bn4 + relu
    p = prep['conv4']
    patches = im2col_3x3(y, prep['conv3']['n']).reshape(B * F * T2, -1)
    y = matmul_bn_relu(patches, p['w'], p['s'], p['b']).reshape(B, F, T2, -1)

    # x.transpose(1, 3).flatten(2): (B, T2, freq_bins * 40)
    c4 = prep['conv4']['n']
    y = jnp.transpose(y[..., :c4], (0, 2, 1, 3)).reshape(B * T2, F * c4)

    # Linear (no bias) + out_bn + relu; final layer stores f32
    p = prep['out']
    y = matmul_bn_relu(y, p['w'], p['s'], p['b'], out_dtype=jnp.float32)
    return y[:, :p['n']].reshape(B, T2, p['n'])


# ---------------------------------------------------------------------------
# Parameter init (mirrors init_layer / init_bn)
# ---------------------------------------------------------------------------

def init_params(key, in_channels, freq_bins, output_size):
    def xavier(k, shape, fan_in, fan_out):
        bound = math.sqrt(6.0 / (fan_in + fan_out))
        return jax.random.uniform(k, shape, jnp.float32, -bound, bound)

    def conv_w(k, cout, cin):
        return xavier(k, (cout, cin, 3, 3), cin * 9, cout * 9)

    def bn(c):
        return (jnp.ones((c,), jnp.float32),    # gamma
                jnp.zeros((c,), jnp.float32),   # beta
                jnp.zeros((c,), jnp.float32),   # running mean
                jnp.ones((c,), jnp.float32))    # running var

    ks = jax.random.split(key, 5)
    return {
        'conv1': conv_w(ks[0], 20, in_channels), 'bn1': bn(20),
        'conv2': conv_w(ks[1], 20, 20),          'bn2': bn(20),
        'conv3': conv_w(ks[2], 40, 20),          'bn3': bn(40),
        'conv4': conv_w(ks[3], 40, 40),          'bn4': bn(40),
        'out_w': xavier(ks[4], (output_size, freq_bins * 40),
                        freq_bins * 40, output_size),
        'out_bn': bn(output_size),
    }


# ---------------------------------------------------------------------------

if __name__ == "__main__":
    key = jax.random.PRNGKey(0)
    B, Cin, F, T = 2, 4, 16, 16          # batch, in_channels, freq_bins, time
    output_size = 32

    k_x, k_p = jax.random.split(key)
    x = jax.random.normal(k_x, (B, Cin, F, T), jnp.float32)
    params = init_params(k_p, Cin, F, output_size)
    prep = prepare_params(params)        # one-time weight repack / BN fold

    fwd = jax.jit(lambda inp: conv_stack_forward(inp, prep))
    out = fwd(x)
    jax.block_until_ready(out)

    assert out.shape == (B, T // 2, output_size), out.shape
    assert bool(jnp.all(jnp.isfinite(out)))
    print("KERNEL_OK")
</pallas_src>

<mosaic_0001>
module attributes {stable_mosaic.version = 11 : i64} {
  func.func @_mm_bn_relu_kernel(%arg0: i32, %arg1: memref<256x36xbf16, #tpu.memory_space<vmem>>, %arg2: memref<36x128xbf16, #tpu.memory_space<vmem>>, %arg3: memref<1x128xf32, #tpu.memory_space<vmem>>, %arg4: memref<1x128xf32, #tpu.memory_space<vmem>>, %arg5: memref<256x128xbf16, #tpu.memory_space<vmem>>) attributes {dimension_semantics = [#tpu.dimension_semantics<parallel>], iteration_bounds = array<i64: 2>, scalar_prefetch = 0 : i64, scratch_operands = 0 : i64, tpu.core_type = #tpu.core_type<tc>, window_params = [{transform_indices = @transform_0, window_bounds = array<i64: 256, 36>}, {pipeline_mode = #tpu.pipeline_mode<synchronous>, transform_indices = @transform_1, window_bounds = array<i64: 36, 128>}, {pipeline_mode = #tpu.pipeline_mode<synchronous>, transform_indices = @transform_2, window_bounds = array<i64: 1, 128>}, {pipeline_mode = #tpu.pipeline_mode<synchronous>, transform_indices = @transform_3, window_bounds = array<i64: 1, 128>}, {transform_indices = @transform_4, window_bounds = array<i64: 256, 128>}]} {
    %c0 = arith.constant 0 : index
    %c0_0 = arith.constant 0 : index
    %0 = vector.load %arg1[%c0, %c0_0] : memref<256x36xbf16, #tpu.memory_space<vmem>>, vector<256x36xbf16>
    %c0_1 = arith.constant 0 : index
    %c0_2 = arith.constant 0 : index
    %1 = vector.load %arg2[%c0_1, %c0_2] : memref<36x128xbf16, #tpu.memory_space<vmem>>, vector<36x128xbf16>
    %cst = arith.constant dense<0.000000e+00> : vector<256x128xf32>
    %2 = tpu.matmul %0, %1, %cst {dimension_numbers = #tpu.dot_dimension_numbers<[1], [0], [0], [1], [0, 0, 1, 1], [], []>} : vector<256x36xbf16>, vector<36x128xbf16>, vector<256x128xf32> -> vector<256x128xf32>
    %c0_3 = arith.constant 0 : index
    %c0_4 = arith.constant 0 : index
    %3 = vector.load %arg3[%c0_3, %c0_4] : memref<1x128xf32, #tpu.memory_space<vmem>>, vector<1x128xf32>
    %4 = vector.broadcast %3 : vector<1x128xf32> to vector<256x128xf32>
    %5 = arith.mulf %2, %4 : vector<256x128xf32>
    %c0_5 = arith.constant 0 : index
    %c0_6 = arith.constant 0 : index
    %6 = vector.load %arg4[%c0_5, %c0_6] : memref<1x128xf32, #tpu.memory_space<vmem>>, vector<1x128xf32>
    %7 = vector.broadcast %6 : vector<1x128xf32> to vector<256x128xf32>
    %8 = arith.addf %5, %7 : vector<256x128xf32>
    %cst_7 = arith.constant 0.000000e+00 : f32
    %9 = vector.broadcast %cst_7 : f32 to vector<256x128xf32>
    %10 = arith.maximumf %8, %9 : vector<256x128xf32>
    %11 = arith.truncf %10 : vector<256x128xf32> to vector<256x128xbf16>
    %c0_8 = arith.constant 0 : index
    %c0_9 = arith.constant 0 : index
    %12 = vector.load %arg5[%c0_8, %c0_9] : memref<256x128xbf16, #tpu.memory_space<vmem>>, vector<256x128xbf16>
    tpu.vector_store %arg5[%c0_8, %c0_9], %11 {strides = array<i32>} : memref<256x128xbf16, #tpu.memory_space<vmem>>, vector<256x128xbf16>,
    return
  }
  func.func @transform_0(%arg0: i32) -> (i32, i32) {
    %c0_i32 = arith.constant 0 : i32
    %c0_i32_0 = arith.constant 0 : i32
    return %arg0, %c0_i32 : i32, i32
  }
  func.func @transform_1(%arg0: i32) -> (i32, i32) {
    %c0_i32 = arith.constant 0 : i32
    %c0_i32_0 = arith.constant 0 : i32
    %c0_i32_1 = arith.constant 0 : i32
    return %c0_i32, %c0_i32_0 : i32, i32
  }
  func.func @transform_2(%arg0: i32) -> (i32, i32) {
    %c0_i32 = arith.constant 0 : i32
    %c0_i32_0 = arith.constant 0 : i32
    %c0_i32_1 = arith.constant 0 : i32
    return %c0_i32, %c0_i32_0 : i32, i32
  }
  func.func @transform_3(%arg0: i32) -> (i32, i32) {
    %c0_i32 = arith.constant 0 : i32
    %c0_i32_0 = arith.constant 0 : i32
    %c0_i32_1 = arith.constant 0 : i32
    return %c0_i32, %c0_i32_0 : i32, i32
  }
  func.func @transform_4(%arg0: i32) -> (i32, i32) {
    %c0_i32 = arith.constant 0 : i32
    %c0_i32_0 = arith.constant 0 : i32
    return %arg0, %c0_i32 : i32, i32
  }
}

module attributes {stable_mosaic.version = 11 : i64} {
  func.func @_mm_bn_relu_pool2_kernel(%arg0: i32, %arg1: memref<128x180xbf16, #tpu.memory_space<vmem>>, %arg2: memref<128x180xbf16, #tpu.memory_space<vmem>>, %arg3: memref<180x128xbf16, #tpu.memory_space<vmem>>, %arg4: memref<1x128xf32, #tpu.memory_space<vmem>>, %arg5: memref<1x128xf32, #tpu.memory_space<vmem>>, %arg6: memref<128x128xbf16, #tpu.memory_space<vmem>>) attributes {dimension_semantics = [#tpu.dimension_semantics<parallel>], iteration_bounds = array<i64: 2>, scalar_prefetch = 0 : i64, scratch_operands = 0 : i64, tpu.core_type = #tpu.core_type<tc>, window_params = [{transform_indices = @transform_0, window_bounds = array<i64: 128, 180>}, {transform_indices = @transform_1, window_bounds = array<i64: 128, 180>}, {pipeline_mode = #tpu.pipeline_mode<synchronous>, transform_indices = @transform_2, window_bounds = array<i64: 180, 128>}, {pipeline_mode = #tpu.pipeline_mode<synchronous>, transform_indices = @transform_3, window_bounds = array<i64: 1, 128>}, {pipeline_mode = #tpu.pipeline_mode<synchronous>, transform_indices = @transform_4, window_bounds = array<i64: 1, 128>}, {transform_indices = @transform_5, window_bounds = array<i64: 128, 128>}]} {
    %c0 = arith.constant 0 : index
    %c0_0 = arith.constant 0 : index
    %0 = vector.load %arg3[%c0, %c0_0] : memref<180x128xbf16, #tpu.memory_space<vmem>>, vector<180x128xbf16>
    %c0_1 = arith.constant 0 : index
    %c0_2 = arith.constant 0 : index
    %1 = vector.load %arg4[%c0_1, %c0_2] : memref<1x128xf32, #tpu.memory_space<vmem>>, vector<1x128xf32>
    %c0_3 = arith.constant 0 : index
    %c0_4 = arith.constant 0 : index
    %2 = vector.load %arg5[%c0_3, %c0_4] : memref<1x128xf32, #tpu.memory_space<vmem>>, vector<1x128xf32>
    %c0_5 = arith.constant 0 : index
    %c0_6 = arith.constant 0 : index
    %3 = vector.load %arg1[%c0_5, %c0_6] : memref<128x180xbf16, #tpu.memory_space<vmem>>, vector<128x180xbf16>
    %cst = arith.constant dense<0.000000e+00> : vector<128x128xf32>
    %4 = tpu.matmul %3, %0, %cst {dimension_numbers = #tpu.dot_dimension_numbers<[1], [0], [0], [1], [0, 0, 1, 1], [], []>} : vector<128x180xbf16>, vector<180x128xbf16>, vector<128x128xf32> -> vector<128x128xf32>
    %5 = vector.broadcast %1 : vector<1x128xf32> to vector<128x128xf32>
    %6 = arith.mulf %4, %5 : vector<128x128xf32>
    %7 = vector.broadcast %2 : vector<1x128xf32> to vector<128x128xf32>
    %8 = arith.addf %6, %7 : vector<128x128xf32>
    %cst_7 = arith.constant 0.000000e+00 : f32
    %9 = vector.broadcast %cst_7 : f32 to vector<128x128xf32>
    %10 = arith.maximumf %8, %9 : vector<128x128xf32>
    %c0_8 = arith.constant 0 : index
    %c0_9 = arith.constant 0 : index
    %11 = vector.load %arg2[%c0_8, %c0_9] : memref<128x180xbf16, #tpu.memory_space<vmem>>, vector<128x180xbf16>
    %cst_10 = arith.constant dense<0.000000e+00> : vector<128x128xf32>
    %12 = tpu.matmul %11, %0, %cst_10 {dimension_numbers = #tpu.dot_dimension_numbers<[1], [0], [0], [1], [0, 0, 1, 1], [], []>} : vector<128x180xbf16>, vector<180x128xbf16>, vector<128x128xf32> -> vector<128x128xf32>
    %13 = vector.broadcast %1 : vector<1x128xf32> to vector<128x128xf32>
    %14 = arith.mulf %12, %13 : vector<128x128xf32>
    %15 = vector.broadcast %2 : vector<1x128xf32> to vector<128x128xf32>
    %16 = arith.addf %14, %15 : vector<128x128xf32>
    %cst_11 = arith.constant 0.000000e+00 : f32
    %17 = vector.broadcast %cst_11 : f32 to vector<128x128xf32>
    %18 = arith.maximumf %16, %17 : vector<128x128xf32>
    %19 = arith.addf %10, %18 : vector<128x128xf32>
    %cst_12 = arith.constant 5.000000e-01 : f32
    %20 = vector.broadcast %cst_12 : f32 to vector<128x128xf32>
    %21 = arith.mulf %19, %20 : vector<128x128xf32>
    %22 = arith.maximumf %10, %18 : vector<128x128xf32>
    %23 = arith.addf %21, %22 : vector<128x128xf32>
    %24 = arith.truncf %23 : vector<128x128xf32> to vector<128x128xbf16>
    %c0_13 = arith.constant 0 : index
    %c0_14 = arith.constant 0 : index
    %25 = vector.load %arg6[%c0_13, %c0_14] : memref<128x128xbf16, #tpu.memory_space<vmem>>, vector<128x128xbf16>
    tpu.vector_store %arg6[%c0_13, %c0_14], %24 {strides = array<i32>} : memref<128x128xbf16, #tpu.memory_space<vmem>>, vector<128x128xbf16>,
    return
  }
  func.func @transform_0(%arg0: i32) -> (i32, i32) {
    %c0_i32 = arith.constant 0 : i32
    %c0_i32_0 = arith.constant 0 : i32
    return %arg0, %c0_i32 : i32, i32
  }
  func.func @transform_1(%arg0: i32) -> (i32, i32) {
    %c0_i32 = arith.constant 0 : i32
    %c0_i32_0 = arith.constant 0 : i32
    return %arg0, %c0_i32 : i32, i32
  }
  func.func @transform_2(%arg0: i32) -> (i32, i32) {
    %c0_i32 = arith.constant 0 : i32
    %c0_i32_0 = arith.constant 0 : i32
    %c0_i32_1 = arith.constant 0 : i32
    return %c0_i32, %c0_i32_0 : i32, i32
  }
  func.func @transform_3(%arg0: i32) -> (i32, i32) {
    %c0_i32 = arith.constant 0 : i32
    %c0_i32_0 = arith.constant 0 : i32
    %c0_i32_1 = arith.constant 0 : i32
    return %c0_i32, %c0_i32_0 : i32, i32
  }
  func.func @transform_4(%arg0: i32) -> (i32, i32) {
    %c0_i32 = arith.constant 0 : i32
    %c0_i32_0 = arith.constant 0 : i32
    %c0_i32_1 = arith.constant 0 : i32
    return %c0_i32, %c0_i32_0 : i32, i32
  }
  func.func @transform_5(%arg0: i32) -> (i32, i32) {
    %c0_i32 = arith.constant 0 : i32
    %c0_i32_0 = arith.constant 0 : i32
    return %arg0, %c0_i32 : i32, i32
  }
}

module attributes {stable_mosaic.version = 11 : i64} {
  func.func @_mm_bn_relu_kernel(%arg0: i32, %arg1: memref<128x180xbf16, #tpu.memory_space<vmem>>, %arg2: memref<180x128xbf16, #tpu.memory_space<vmem>>, %arg3: memref<1x128xf32, #tpu.memory_space<vmem>>, %arg4: memref<1x128xf32, #tpu.memory_space<vmem>>, %arg5: memref<128x128xbf16, #tpu.memory_space<vmem>>) attributes {dimension_semantics = [#tpu.dimension_semantics<parallel>], iteration_bounds = array<i64: 2>, scalar_prefetch = 0 : i64, scratch_operands = 0 : i64, tpu.core_type = #tpu.core_type<tc>, window_params = [{transform_indices = @transform_0, window_bounds = array<i64: 128, 180>}, {pipeline_mode = #tpu.pipeline_mode<synchronous>, transform_indices = @transform_1, window_bounds = array<i64: 180, 128>}, {pipeline_mode = #tpu.pipeline_mode<synchronous>, transform_indices = @transform_2, window_bounds = array<i64: 1, 128>}, {pipeline_mode = #tpu.pipeline_mode<synchronous>, transform_indices = @transform_3, window_bounds = array<i64: 1, 128>}, {transform_indices = @transform_4, window_bounds = array<i64: 128, 128>}]} {
    %c0 = arith.constant 0 : index
    %c0_0 = arith.constant 0 : index
    %0 = vector.load %arg1[%c0, %c0_0] : memref<128x180xbf16, #tpu.memory_space<vmem>>, vector<128x180xbf16>
    %c0_1 = arith.constant 0 : index
    %c0_2 = arith.constant 0 : index
    %1 = vector.load %arg2[%c0_1, %c0_2] : memref<180x128xbf16, #tpu.memory_space<vmem>>, vector<180x128xbf16>
    %cst = arith.constant dense<0.000000e+00> : vector<128x128xf32>
    %2 = tpu.matmul %0, %1, %cst {dimension_numbers = #tpu.dot_dimension_numbers<[1], [0], [0], [1], [0, 0, 1, 1], [], []>} : vector<128x180xbf16>, vector<180x128xbf16>, vector<128x128xf32> -> vector<128x128xf32>
    %c0_3 = arith.constant 0 : index
    %c0_4 = arith.constant 0 : index
    %3 = vector.load %arg3[%c0_3, %c0_4] : memref<1x128xf32, #tpu.memory_space<vmem>>, vector<1x128xf32>
    %4 = vector.broadcast %3 : vector<1x128xf32> to vector<128x128xf32>
    %5 = arith.mulf %2, %4 : vector<128x128xf32>
    %c0_5 = arith.constant 0 : index
    %c0_6 = arith.constant 0 : index
    %6 = vector.load %arg4[%c0_5, %c0_6] : memref<1x128xf32, #tpu.memory_space<vmem>>, vector<1x128xf32>
    %7 = vector.broadcast %6 : vector<1x128xf32> to vector<128x128xf32>
    %8 = arith.addf %5, %7 : vector<128x128xf32>
    %cst_7 = arith.constant 0.000000e+00 : f32
    %9 = vector.broadcast %cst_7 : f32 to vector<128x128xf32>
    %10 = arith.maximumf %8, %9 : vector<128x128xf32>
    %11 = arith.truncf %10 : vector<128x128xf32> to vector<128x128xbf16>
    %c0_8 = arith.constant 0 : index
    %c0_9 = arith.constant 0 : index
    %12 = vector.load %arg5[%c0_8, %c0_9] : memref<128x128xbf16, #tpu.memory_space<vmem>>, vector<128x128xbf16>
    tpu.vector_store %arg5[%c0_8, %c0_9], %11 {strides = array<i32>} : memref<128x128xbf16, #tpu.memory_space<vmem>>, vector<128x128xbf16>,
    return
  }
  func.func @transform_0(%arg0: i32) -> (i32, i32) {
    %c0_i32 = arith.constant 0 : i32
    %c0_i32_0 = arith.constant 0 : i32
    return %arg0, %c0_i32 : i32, i32
  }
  func.func @transform_1(%arg0: i32) -> (i32, i32) {
    %c0_i32 = arith.constant 0 : i32
    %c0_i32_0 = arith.constant 0 : i32
    %c0_i32_1 = arith.constant 0 : i32
    return %c0_i32, %c0_i32_0 : i32, i32
  }
  func.func @transform_2(%arg0: i32) -> (i32, i32) {
    %c0_i32 = arith.constant 0 : i32
    %c0_i32_0 = arith.constant 0 : i32
    %c0_i32_1 = arith.constant 0 : i32
    return %c0_i32, %c0_i32_0 : i32, i32
  }
  func.func @transform_3(%arg0: i32) -> (i32, i32) {
    %c0_i32 = arith.constant 0 : i32
    %c0_i32_0 = arith.constant 0 : i32
    %c0_i32_1 = arith.constant 0 : i32
    return %c0_i32, %c0_i32_0 : i32, i32
  }
  func.func @transform_4(%arg0: i32) -> (i32, i32) {
    %c0_i32 = arith.constant 0 : i32
    %c0_i32_0 = arith.constant 0 : i32
    return %arg0, %c0_i32 : i32, i32
  }
}

module attributes {stable_mosaic.version = 11 : i64} {
  func.func @_mm_bn_relu_kernel(%arg0: i32, %arg1: memref<128x360xbf16, #tpu.memory_space<vmem>>, %arg2: memref<360x128xbf16, #tpu.memory_space<vmem>>, %arg3: memref<1x128xf32, #tpu.memory_space<vmem>>, %arg4: memref<1x128xf32, #tpu.memory_space<vmem>>, %arg5: memref<128x128xbf16, #tpu.memory_space<vmem>>) attributes {dimension_semantics = [#tpu.dimension_semantics<parallel>], iteration_bounds = array<i64: 2>, scalar_prefetch = 0 : i64, scratch_operands = 0 : i64, tpu.core_type = #tpu.core_type<tc>, window_params = [{transform_indices = @transform_0, window_bounds = array<i64: 128, 360>}, {pipeline_mode = #tpu.pipeline_mode<synchronous>, transform_indices = @transform_1, window_bounds = array<i64: 360, 128>}, {pipeline_mode = #tpu.pipeline_mode<synchronous>, transform_indices = @transform_2, window_bounds = array<i64: 1, 128>}, {pipeline_mode = #tpu.pipeline_mode<synchronous>, transform_indices = @transform_3, window_bounds = array<i64: 1, 128>}, {transform_indices = @transform_4, window_bounds = array<i64: 128, 128>}]} {
    %c0 = arith.constant 0 : index
    %c0_0 = arith.constant 0 : index
    %0 = vector.load %arg1[%c0, %c0_0] : memref<128x360xbf16, #tpu.memory_space<vmem>>, vector<128x360xbf16>
    %c0_1 = arith.constant 0 : index
    %c0_2 = arith.constant 0 : index
    %1 = vector.load %arg2[%c0_1, %c0_2] : memref<360x128xbf16, #tpu.memory_space<vmem>>, vector<360x128xbf16>
    %cst = arith.constant dense<0.000000e+00> : vector<128x128xf32>
    %2 = tpu.matmul %0, %1, %cst {dimension_numbers = #tpu.dot_dimension_numbers<[1], [0], [0], [1], [0, 0, 1, 1], [], []>} : vector<128x360xbf16>, vector<360x128xbf16>, vector<128x128xf32> -> vector<128x128xf32>
    %c0_3 = arith.constant 0 : index
    %c0_4 = arith.constant 0 : index
    %3 = vector.load %arg3[%c0_3, %c0_4] : memref<1x128xf32, #tpu.memory_space<vmem>>, vector<1x128xf32>
    %4 = vector.broadcast %3 : vector<1x128xf32> to vector<128x128xf32>
    %5 = arith.mulf %2, %4 : vector<128x128xf32>
    %c0_5 = arith.constant 0 : index
    %c0_6 = arith.constant 0 : index
    %6 = vector.load %arg4[%c0_5, %c0_6] : memref<1x128xf32, #tpu.memory_space<vmem>>, vector<1x128xf32>
    %7 = vector.broadcast %6 : vector<1x128xf32> to vector<128x128xf32>
    %8 = arith.addf %5, %7 : vector<128x128xf32>
    %cst_7 = arith.constant 0.000000e+00 : f32
    %9 = vector.broadcast %cst_7 : f32 to vector<128x128xf32>
    %10 = arith.maximumf %8, %9 : vector<128x128xf32>
    %11 = arith.truncf %10 : vector<128x128xf32> to vector<128x128xbf16>
    %c0_8 = arith.constant 0 : index
    %c0_9 = arith.constant 0 : index
    %12 = vector.load %arg5[%c0_8, %c0_9] : memref<128x128xbf16, #tpu.memory_space<vmem>>, vector<128x128xbf16>
    tpu.vector_store %arg5[%c0_8, %c0_9], %11 {strides = array<i32>} : memref<128x128xbf16, #tpu.memory_space<vmem>>, vector<128x128xbf16>,
    return
  }
  func.func @transform_0(%arg0: i32) -> (i32, i32) {
    %c0_i32 = arith.constant 0 : i32
    %c0_i32_0 = arith.constant 0 : i32
    return %arg0, %c0_i32 : i32, i32
  }
  func.func @transform_1(%arg0: i32) -> (i32, i32) {
    %c0_i32 = arith.constant 0 : i32
    %c0_i32_0 = arith.constant 0 : i32
    %c0_i32_1 = arith.constant 0 : i32
    return %c0_i32, %c0_i32_0 : i32, i32
  }
  func.func @transform_2(%arg0: i32) -> (i32, i32) {
    %c0_i32 = arith.constant 0 : i32
    %c0_i32_0 = arith.constant 0 : i32
    %c0_i32_1 = arith.constant 0 : i32
    return %c0_i32, %c0_i32_0 : i32, i32
  }
  func.func @transform_3(%arg0: i32) -> (i32, i32) {
    %c0_i32 = arith.constant 0 : i32
    %c0_i32_0 = arith.constant 0 : i32
    %c0_i32_1 = arith.constant 0 : i32
    return %c0_i32, %c0_i32_0 : i32, i32
  }
  func.func @transform_4(%arg0: i32) -> (i32, i32) {
    %c0_i32 = arith.constant 0 : i32
    %c0_i32_0 = arith.constant 0 : i32
    return %arg0, %c0_i32 : i32, i32
  }
}

module attributes {stable_mosaic.version = 11 : i64} {
  func.func @_mm_bn_relu_kernel(%arg0: i32, %arg1: memref<8x640xbf16, #tpu.memory_space<vmem>>, %arg2: memref<640x128xbf16, #tpu.memory_space<vmem>>, %arg3: memref<1x128xf32, #tpu.memory_space<vmem>>, %arg4: memref<1x128xf32, #tpu.memory_space<vmem>>, %arg5: memref<8x128xf32, #tpu.memory_space<vmem>>) attributes {dimension_semantics = [#tpu.dimension_semantics<parallel>], iteration_bounds = array<i64: 2>, scalar_prefetch = 0 : i64, scratch_operands = 0 : i64, tpu.core_type = #tpu.core_type<tc>, window_params = [{transform_indices = @transform_0, window_bounds = array<i64: 8, 640>}, {pipeline_mode = #tpu.pipeline_mode<synchronous>, transform_indices = @transform_1, window_bounds = array<i64: 640, 128>}, {pipeline_mode = #tpu.pipeline_mode<synchronous>, transform_indices = @transform_2, window_bounds = array<i64: 1, 128>}, {pipeline_mode = #tpu.pipeline_mode<synchronous>, transform_indices = @transform_3, window_bounds = array<i64: 1, 128>}, {transform_indices = @transform_4, window_bounds = array<i64: 8, 128>}]} {
    %c0 = arith.constant 0 : index
    %c0_0 = arith.constant 0 : index
    %0 = vector.load %arg1[%c0, %c0_0] : memref<8x640xbf16, #tpu.memory_space<vmem>>, vector<8x640xbf16>
    %c0_1 = arith.constant 0 : index
    %c0_2 = arith.constant 0 : index
    %1 = vector.load %arg2[%c0_1, %c0_2] : memref<640x128xbf16, #tpu.memory_space<vmem>>, vector<640x128xbf16>
    %cst = arith.constant dense<0.000000e+00> : vector<8x128xf32>
    %2 = tpu.matmul %0, %1, %cst {dimension_numbers = #tpu.dot_dimension_numbers<[1], [0], [0], [1], [0, 0, 1, 1], [], []>} : vector<8x640xbf16>, vector<640x128xbf16>, vector<8x128xf32> -> vector<8x128xf32>
    %c0_3 = arith.constant 0 : index
    %c0_4 = arith.constant 0 : index
    %3 = vector.load %arg3[%c0_3, %c0_4] : memref<1x128xf32, #tpu.memory_space<vmem>>, vector<1x128xf32>
    %4 = vector.broadcast %3 : vector<1x128xf32> to vector<8x128xf32>
    %5 = arith.mulf %2, %4 : vector<8x128xf32>
    %c0_5 = arith.constant 0 : index
    %c0_6 = arith.constant 0 : index
    %6 = vector.load %arg4[%c0_5, %c0_6] : memref<1x128xf32, #tpu.memory_space<vmem>>, vector<1x128xf32>
    %7 = vector.broadcast %6 : vector<1x128xf32> to vector<8x128xf32>
    %8 = arith.addf %5, %7 : vector<8x128xf32>
    %cst_7 = arith.constant 0.000000e+00 : f32
    %9 = vector.broadcast %cst_7 : f32 to vector<8x128xf32>
    %10 = arith.maximumf %8, %9 : vector<8x128xf32>
    %c0_8 = arith.constant 0 : index
    %c0_9 = arith.constant 0 : index
    %11 = vector.load %arg5[%c0_8, %c0_9] : memref<8x128xf32, #tpu.memory_space<vmem>>, vector<8x128xf32>
    tpu.vector_store %arg5[%c0_8, %c0_9], %10 {strides = array<i32>} : memref<8x128xf32, #tpu.memory_space<vmem>>, vector<8x128xf32>,
    return
  }
  func.func @transform_0(%arg0: i32) -> (i32, i32) {
    %c0_i32 = arith.constant 0 : i32
    %c0_i32_0 = arith.constant 0 : i32
    return %arg0, %c0_i32 : i32, i32
  }
  func.func @transform_1(%arg0: i32) -> (i32, i32) {
    %c0_i32 = arith.constant 0 : i32
    %c0_i32_0 = arith.constant 0 : i32
    %c0_i32_1 = arith.constant 0 : i32
    return %c0_i32, %c0_i32_0 : i32, i32
  }
  func.func @transform_2(%arg0: i32) -> (i32, i32) {
    %c0_i32 = arith.constant 0 : i32
    %c0_i32_0 = arith.constant 0 : i32
    %c0_i32_1 = arith.constant 0 : i32
    return %c0_i32, %c0_i32_0 : i32, i32
  }
  func.func @transform_3(%arg0: i32) -> (i32, i32) {
    %c0_i32 = arith.constant 0 : i32
    %c0_i32_0 = arith.constant 0 : i32
    %c0_i32_1 = arith.constant 0 : i32
    return %c0_i32, %c0_i32_0 : i32, i32
  }
  func.func @transform_4(%arg0: i32) -> (i32, i32) {
    %c0_i32 = arith.constant 0 : i32
    %c0_i32_0 = arith.constant 0 : i32
    return %arg0, %c0_i32 : i32, i32
  }
}

</mosaic_0001>

<bundles_post_ra>
// kernel: _lambda_.5
= control target key start
LH: loop header
LB: loop body
LE: loop exit
PB: predicated region body
PF: predicated region fallthrough
CT: control target
= control target key end

     0   :  { %s1206_s15 = smov 0   ;;  %s1365_s0 = inlined_call_operand.vmem [shape: bf16[512,36], index: 0, kind: input, shape index: {}]   ;;  %s1366_s1 = inlined_call_operand.vmem [shape: bf16[36,128], index: 1, kind: input, shape index: {}]   ;;  %s1367_s2 = inlined_call_operand.vmem [shape: f32[1,128], index: 2, kind: input, shape index: {}]   ;;  %s1368_s3 = inlined_call_operand.vmem [shape: f32[1,128], index: 3, kind: input, shape index: {}]   ;;  %s1369_s4 = inlined_call_operand.vmem [shape: bf16[512,128], index: 4, kind: output, shape index: {}]  }
   0x1 LB: > { %s874_s16 = sadd.s32 4294967295, %s1179_s15   ;;  %p878_p0 = scmp.ge.s32.totalorder %s1179_s15, 1  ;;  %s1179_s15 = sphi %s1206_s15, %s14_s15  }
   0x2   : > { %p163_p1 = scmp.lt.s32.totalorder %s1179_s15, 3 }
   0x4   : > { %p164_p2 = pnand %p878_p0, %p163_p1 }
   0x5   : > { %v1154_v0 = vld [vmem:[%s1366_s1] sm:$0xff] (!%p164_p2)   ;;  %v1155_v1 = vld [vmem:[%s1366_s1 + $0x8] sm:$0xff] (!%p164_p2)   ;;  %s879_s21 = sshll.u32 (!%p164_p2), %s874_s16, 5  ;;  %v1156_v2 = vld [vmem:[%s1366_s1 + $0x10] ss:$0 sps:$4 sm:$0x33] (!%p164_p2)  }
   0x6   : > { %167 = sbr.rel (%p164_p2) target bundleno = 268 (0x10c), region = 36  ;;  %1100 = vmatprep.subr.bf16.mxu0 (!%p164_p2), %v1154_v0  ;;  %1138 = vmatprep.subr.bf16.mxu1 (!%p164_p2), %v1154_v0  ;;  %p190_p3 = scmp.lt.s32.totalorder (!%p164_p2), %s879_s21, 63  ;;  %vm383_vm0 = vcmask (!%p164_p2), 1041408   ;;  %vm334_vm1 = vcmask (!%p164_p2), 293888   ;;  %v1268_v20 = vld [vmem:[%s1367_s2] ss:$0 sm:$0xff] (!%p164_p2) }
   0x7   : > { %1101 = vmatpush3.bf16.msra.mxu0 (!%p164_p2), %v1154_v0  ;;  %1141 = vmatpush3.bf16.msra.mxu1 (!%p164_p2), %v1154_v0  ;;  %v385_v3 = vsel (!%p164_p2), %vm383_vm0, %v1156_v2, 0  ;;  %v1273_v22 = vld [vmem:[%s1368_s3] ss:$0 sm:$0xff] (!%p164_p2) }
   0x8   : > { %1102 = vmatprep.subr.bf16.mxu0 (!%p164_p2), %v1155_v1  ;;  %1139 = vmatprep.subr.bf16.mxu1 (!%p164_p2), %v1155_v1 }
   0xb   : > { %1103 = vmatpush3.bf16.msra.mxu0 (!%p164_p2), %v1155_v1  ;;  %1142 = vmatpush3.bf16.msra.mxu1 (!%p164_p2), %v1155_v1 }
   0xc   : > { %1144 = vmatprep.subr.msk.bf16.mxu0 (!%p164_p2), %vm383_vm0, %v1156_v2  ;;  %1145 = vmatprep.subr.msk.bf16.mxu1 (!%p164_p2), %vm383_vm0, %v1156_v2 }
   0xd   : > { %s1371_s21 = smov (!%p190_p3, %s879_s21), 63 }
   0xe   : > { %s880_s24 = sshll.u32 %s1371_s21, 2 }
   0xf   : > { %s1231_s27 = scalar_lea.vmem %s1365_s0, %s880_s24  ;;  %1105 = vmatpush3.bf16.msra.mxu0 %v385_v3  ;;  %1143 = vmatpush3.bf16.msra.mxu1 %v385_v3  ;;  %s1296_s8 = scalar_lea.vmem %s1369_s4, %s880_s24 }
  0x10   : > { %v1157_v4 = vld [vmem:[%s1231_s27] sm:$0xff]   ;;  %v1159_v6 = vld [vmem:[%s1231_s27 + $0x8] sm:$0xff]   ;;  %v1161_v8 = vld [vmem:[%s1231_s27 + $0x10] sm:$0xff]  }
  0x11   : > { %v1158_v5 = vld [vmem:[%s1231_s27 + $0x40] sm:$0xff]   ;;  %1106 = vmatprep.mubr.msk.bf16.mxu0 %vm334_vm1, %v1157_v4  ;;  %v1160_v7 = vld [vmem:[%s1231_s27 + $0x48] sm:$0xff]   ;;  %v1162_v9 = vld [vmem:[%s1231_s27 + $0x50] sm:$0xff]  }
  0x12   : > { %1122 = vmatprep.mubr.msk.bf16.mxu1 %vm334_vm1, %v1158_v5  ;;  %1107 = vmatmul.mubr.msk.bf16.vlgmr.msra.gmra.mrb[0].mxu0 %vm334_vm1, %v1159_v6  ;;  %v1163_v10 = vld [vmem:[%s1231_s27 + $0x18] sm:$0xff]   ;;  %v1165_v12 = vld [vmem:[%s1231_s27 + $0x20] sm:$0xff]   ;;  %v1167_v14 = vld [vmem:[%s1231_s27 + $0x28] sm:$0xff]  }
  0x13   : > { %1123 = vmatmul.mubr.msk.bf16.vlgmr.msra.gmra.mrb[0].mxu1 %vm334_vm1, %v1160_v7  ;;  %1110 = vmatprep.mubr.msk.bf16.mxu0 %vm334_vm1, %v1161_v8  ;;  %v1164_v11 = vld [vmem:[%s1231_s27 + $0x58] sm:$0xff]   ;;  %v1166_v13 = vld [vmem:[%s1231_s27 + $0x60] sm:$0xff]   ;;  %v1168_v15 = vld [vmem:[%s1231_s27 + $0x68] sm:$0xff]  }
  0x14   : > { %1126 = vmatprep.mubr.msk.bf16.mxu1 %vm334_vm1, %v1162_v9  ;;  %v1169_v16 = vld [vmem:[%s1231_s27 + $0x30] sm:$0xff]   ;;  %v1171_v18 = vld [vmem:[%s1231_s27 + $0x38] sm:$0xff]  }
  0x15   : > { %v1170_v17 = vld [vmem:[%s1231_s27 + $0x70] sm:$0xff]   ;;  %v1172_v19 = vld [vmem:[%s1231_s27 + $0x78] sm:$0xff]  }
  0x1a   : > { %1111 = vmatmul.mubr.msk.bf16.gmra.mrb[4].mxu0 %vm334_vm1, %v1163_v10 }
  0x1b   : > { %1127 = vmatmul.mubr.msk.bf16.gmra.mrb[4].mxu1 %vm334_vm1, %v1164_v11  ;;  %1114 = vmatprep.mubr.msk.bf16.mxu0 %vm334_vm1, %v1165_v12 }
  0x1c   : > { %1130 = vmatprep.mubr.msk.bf16.mxu1 %vm334_vm1, %v1166_v13 }
  0x22   : > { %1115 = vmatmul.mubr.msk.bf16.gmra.mrb[8].mxu0 %vm334_vm1, %v1167_v14 }
  0x23   : > { %1131 = vmatmul.mubr.msk.bf16.gmra.mrb[8].mxu1 %vm334_vm1, %v1168_v15  ;;  %1118 = vmatprep.mubr.msk.bf16.mxu0 %vm334_vm1, %v1169_v16 }
  0x24   : > { %1134 = vmatprep.mubr.msk.bf16.mxu1 %vm334_vm1, %v1170_v17 }
  0x2a   : > { %1119 = vmatmul.mubr.msk.bf16.gmra.mrb[12].mxu0 %vm334_vm1, %v1171_v18 }
  0x2b   : > { %1135 = vmatmul.mubr.msk.bf16.gmra.mrb[12].mxu1 %vm334_vm1, %v1172_v19 }
  0xe5   : > { %v1108_v21 = vpop.f32.mrb[0].mxu0 }
  0xe6   : > { %v1124_v23 = vpop.f32.mrb[0].mxu1  ;;  %v557_v24 = vmul.f32 %v1108_v21, %v1268_v20  ;;  %v421_v26 = vpop.f32.mrb[1].mxu0 }
  0xe7   : > { %v573_v25 = vmul.f32 %v1124_v23, %v1268_v20  ;;  %v485_v27 = vpop.f32.mrb[1].mxu1  ;;  %v555_v28 = vmul.f32 %v1268_v20, %v421_v26  ;;  %v1109_v30 = vpop.f32.mrb[2].mxu0 }
  0xe8   : > { %v571_v29 = vmul.f32 %v1268_v20, %v485_v27  ;;  %v1125_v31 = vpop.f32.mrb[2].mxu1  ;;  %v596_v32 = vadd.f32 %v1273_v22, %v557_v24  ;;  %v558_v34 = vmul.f32 %v1109_v30, %v1268_v20  ;;  %v424_v36 = vpop.f32.mrb[3].mxu0 }
  0xe9   : > { %v612_v33 = vadd.f32 %v1273_v22, %v573_v25  ;;  %v574_v35 = vmul.f32 %v1125_v31, %v1268_v20  ;;  %v488_v37 = vpop.f32.mrb[3].mxu1  ;;  %v594_v38 = vadd.f32 %v1273_v22, %v555_v28  ;;  %v556_v40 = vmul.f32 %v1268_v20, %v424_v36 }
  0xea   : > { %v610_v39 = vadd.f32 %v1273_v22, %v571_v29  ;;  %v572_v41 = vmul.f32 %v1268_v20, %v488_v37  ;;  %v597_v42 = vadd.f32 %v1273_v22, %v558_v34  ;;  %v628_v46 = vmax.f32 %v596_v32, 0.0 }
  0xeb   : > { %v613_v43 = vadd.f32 %v1273_v22, %v574_v35  ;;  %v595_v44 = vadd.f32 %v1273_v22, %v556_v40  ;;  %v644_v47 = vmax.f32 %v612_v33, 0.0  ;;  %v626_v50 = vmax.f32 %v594_v38, 0.0 }
  0xec   : > { %v611_v45 = vadd.f32 %v1273_v22, %v572_v41  ;;  %v629_v48 = vmax.f32 %v597_v42, 0.0  ;;  %v642_v51 = vmax.f32 %v610_v39, 0.0 }
  0xed   : > { %v645_v49 = vmax.f32 %v613_v43, 0.0  ;;  %v627_v52 = vmax.f32 %v595_v44, 0.0  ;;  %v1112_v54 = vpop.f32.mrb[4].mxu0 }
  0xee   : > { %v643_v53 = vmax.f32 %v611_v45, 0.0  ;;  %v1128_v55 = vpop.f32.mrb[4].mxu1  ;;  %v994_v56 = vpack.c.bf16 %v629_v48, %v628_v46  ;;  %v561_v58 = vmul.f32 %v1112_v54, %v1268_v20  ;;  %v437_v60 = vpop.f32.mrb[5].mxu0 }
  0xef   : > { %v1034_v57 = vpack.c.bf16 %v645_v49, %v644_v47  ;;  %v577_v59 = vmul.f32 %v1128_v55, %v1268_v20  ;;  %v501_v61 = vpop.f32.mrb[5].mxu1  ;;  %v989_v62 = vpack.c.bf16 %v627_v52, %v626_v50  ;;  %v559_v0 = vmul.f32 %v1268_v20, %v437_v60  ;;  %v1113_v2 = vpop.f32.mrb[6].mxu0 }
  0xf0   : > { %v1029_v63 = vpack.c.bf16 %v643_v53, %v642_v51  ;;  %v575_v1 = vmul.f32 %v1268_v20, %v501_v61  ;;  %v1129_v3 = vpop.f32.mrb[6].mxu1  ;;  %1066 = vst [vmem:[%s1296_s8 + $0x8] sm:$0xff] %v994_v56   ;;  %v600_v4 = vadd.f32 %v1273_v22, %v561_v58  ;;  %v562_v6 = vmul.f32 %v1113_v2, %v1268_v20  ;;  %v440_v8 = vpop.f32.mrb[7].mxu0 }
  0xf1   : > { %1074 = vst [vmem:[%s1296_s8 + $0x48] sm:$0xff] %v1034_v57   ;;  %v616_v5 = vadd.f32 %v1273_v22, %v577_v59  ;;  %v578_v7 = vmul.f32 %v1129_v3, %v1268_v20  ;;  %v504_v9 = vpop.f32.mrb[7].mxu1  ;;  %990 = vst [vmem:[%s1296_s8] sm:$0xff] %v989_v62   ;;  %v598_v10 = vadd.f32 %v1273_v22, %v559_v0 }
  0xf2   : > { %1073 = vst [vmem:[%s1296_s8 + $0x40] sm:$0xff] %v1029_v63   ;;  %v614_v11 = vadd.f32 %v1273_v22, %v575_v1  ;;  %v560_v12 = vmul.f32 %v1268_v20, %v440_v8  ;;  %v576_v13 = vmul.f32 %v1268_v20, %v504_v9  ;;  %v601_v14 = vadd.f32 %v1273_v22, %v562_v6 }
  0xf3   : > { %v617_v15 = vadd.f32 %v1273_v22, %v578_v7  ;;  %v632_v18 = vmax.f32 %v600_v4, 0.0  ;;  %v648_v19 = vmax.f32 %v616_v5, 0.0  ;;  %v630_v24 = vmax.f32 %v598_v10, 0.0 }
  0xf4   : > { %v599_v16 = vadd.f32 %v1273_v22, %v560_v12  ;;  %v615_v17 = vadd.f32 %v1273_v22, %v576_v13  ;;  %v633_v21 = vmax.f32 %v601_v14, 0.0  ;;  %v646_v25 = vmax.f32 %v614_v11, 0.0 }
  0xf5   : > { %v649_v23 = vmax.f32 %v617_v15, 0.0  ;;  %v1116_v28 = vpop.f32.mrb[8].mxu0 }
  0xf6   : > { %v631_v26 = vmax.f32 %v599_v16, 0.0  ;;  %v647_v27 = vmax.f32 %v615_v17, 0.0  ;;  %v1132_v29 = vpop.f32.mrb[8].mxu1  ;;  %v1004_v30 = vpack.c.bf16 %v633_v21, %v632_v18  ;;  %v565_v32 = vmul.f32 %v1116_v28, %v1268_v20  ;;  %v453_v34 = vpop.f32.mrb[9].mxu0 }
  0xf7   : > { %v1044_v31 = vpack.c.bf16 %v649_v23, %v648_v19  ;;  %v581_v33 = vmul.f32 %v1132_v29, %v1268_v20  ;;  %v517_v35 = vpop.f32.mrb[9].mxu1  ;;  %v563_v38 = vmul.f32 %v1268_v20, %v453_v34  ;;  %v1117_v40 = vpop.f32.mrb[10].mxu0 }
  0xf8   : > { %v999_v36 = vpack.c.bf16 %v631_v26, %v630_v24  ;;  %v1039_v37 = vpack.c.bf16 %v647_v27, %v646_v25  ;;  %v579_v39 = vmul.f32 %v1268_v20, %v517_v35  ;;  %v1133_v41 = vpop.f32.mrb[10].mxu1  ;;  %1068 = vst [vmem:[%s1296_s8 + $0x18] sm:$0xff] %v1004_v30   ;;  %v604_v42 = vadd.f32 %v1273_v22, %v565_v32  ;;  %v456_v46 = vpop.f32.mrb[11].mxu0 }
  0xf9   : > { %1076 = vst [vmem:[%s1296_s8 + $0x58] sm:$0xff] %v1044_v31   ;;  %v620_v43 = vadd.f32 %v1273_v22, %v581_v33  ;;  %v566_v44 = vmul.f32 %v1117_v40, %v1268_v20  ;;  %v582_v45 = vmul.f32 %v1133_v41, %v1268_v20  ;;  %v520_v47 = vpop.f32.mrb[11].mxu1  ;;  %v602_v48 = vadd.f32 %v1273_v22, %v563_v38 }
  0xfa   : > { %1067 = vst [vmem:[%s1296_s8 + $0x10] sm:$0xff] %v999_v36   ;;  %1075 = vst [vmem:[%s1296_s8 + $0x50] sm:$0xff] %v1039_v37   ;;  %v618_v49 = vadd.f32 %v1273_v22, %v579_v39  ;;  %v564_v50 = vmul.f32 %v1268_v20, %v456_v46  ;;  %v580_v51 = vmul.f32 %v1268_v20, %v520_v47  ;;  %v636_v56 = vmax.f32 %v604_v42, 0.0 }
  0xfb   : > { %v605_v52 = vadd.f32 %v1273_v22, %v566_v44  ;;  %v621_v53 = vadd.f32 %v1273_v22, %v582_v45  ;;  %v652_v57 = vmax.f32 %v620_v43, 0.0  ;;  %v634_v60 = vmax.f32 %v602_v48, 0.0 }
  0xfc   : > { %v603_v54 = vadd.f32 %v1273_v22, %v564_v50  ;;  %v619_v55 = vadd.f32 %v1273_v22, %v580_v51  ;;  %v650_v61 = vmax.f32 %v618_v49, 0.0 }
  0xfd   : > { %v637_v58 = vmax.f32 %v605_v52, 0.0  ;;  %v653_v59 = vmax.f32 %v621_v53, 0.0  ;;  %v1120_v0 = vpop.f32.mrb[12].mxu0 }
  0xfe   : > { %v635_v62 = vmax.f32 %v603_v54, 0.0  ;;  %v651_v63 = vmax.f32 %v619_v55, 0.0  ;;  %v1136_v1 = vpop.f32.mrb[12].mxu1  ;;  %v569_v4 = vmul.f32 %v1120_v0, %v1268_v20  ;;  %v469_v6 = vpop.f32.mrb[13].mxu0 }
  0xff   : > { %v1014_v2 = vpack.c.bf16 %v637_v58, %v636_v56  ;;  %v1054_v3 = vpack.c.bf16 %v653_v59, %v652_v57  ;;  %v585_v5 = vmul.f32 %v1136_v1, %v1268_v20  ;;  %v533_v7 = vpop.f32.mrb[13].mxu1  ;;  %v567_v10 = vmul.f32 %v1268_v20, %v469_v6  ;;  %v1121_v12 = vpop.f32.mrb[14].mxu0 }
 0x100   : > { %v1009_v8 = vpack.c.bf16 %v635_v62, %v634_v60  ;;  %v1049_v9 = vpack.c.bf16 %v651_v63, %v650_v61  ;;  %v583_v11 = vmul.f32 %v1268_v20, %v533_v7  ;;  %v1137_v13 = vpop.f32.mrb[14].mxu1  ;;  %v608_v14 = vadd.f32 %v1273_v22, %v569_v4  ;;  %v472_v18 = vpop.f32.mrb[15].mxu0 }
 0x101   : > { %1070 = vst [vmem:[%s1296_s8 + $0x28] sm:$0xff] %v1014_v2   ;;  %1078 = vst [vmem:[%s1296_s8 + $0x68] sm:$0xff] %v1054_v3   ;;  %v624_v15 = vadd.f32 %v1273_v22, %v585_v5  ;;  %v570_v16 = vmul.f32 %v1121_v12, %v1268_v20  ;;  %v586_v17 = vmul.f32 %v1137_v13, %v1268_v20  ;;  %v536_v19 = vpop.f32.mrb[15].mxu1 }
 0x102   : > { %1069 = vst [vmem:[%s1296_s8 + $0x20] sm:$0xff] %v1009_v8   ;;  %1077 = vst [vmem:[%s1296_s8 + $0x60] sm:$0xff] %v1049_v9   ;;  %v606_v21 = vadd.f32 %v1273_v22, %v567_v10  ;;  %v622_v23 = vadd.f32 %v1273_v22, %v583_v11  ;;  %v568_v24 = vmul.f32 %v1268_v20, %v472_v18  ;;  %v640_v30 = vmax.f32 %v608_v14, 0.0 }
 0x103   : > { %v584_v25 = vmul.f32 %v1268_v20, %v536_v19  ;;  %v609_v26 = vadd.f32 %v1273_v22, %v570_v16  ;;  %v625_v27 = vadd.f32 %v1273_v22, %v586_v17  ;;  %v656_v31 = vmax.f32 %v624_v15, 0.0 }
 0x104   : > { %v607_v28 = vadd.f32 %v1273_v22, %v568_v24  ;;  %v638_v34 = vmax.f32 %v606_v21, 0.0  ;;  %v654_v35 = vmax.f32 %v622_v23, 0.0 }
 0x105   : > { %v623_v29 = vadd.f32 %v1273_v22, %v584_v25  ;;  %v641_v32 = vmax.f32 %v609_v26, 0.0  ;;  %v657_v33 = vmax.f32 %v625_v27, 0.0 }
 0x106   : > { %v639_v36 = vmax.f32 %v607_v28, 0.0 }
 0x107   : > { %v655_v20 = vmax.f32 %v623_v29, 0.0  ;;  %v1024_v37 = vpack.c.bf16 %v641_v32, %v640_v30  ;;  %v1064_v38 = vpack.c.bf16 %v657_v33, %v656_v31 }
 0x108   : > { %v1019_v39 = vpack.c.bf16 %v639_v36, %v638_v34 }
 0x109   : > { %v1059_v40 = vpack.c.bf16 %v655_v20, %v654_v35  ;;  %1072 = vst [vmem:[%s1296_s8 + $0x38] sm:$0xff] %v1024_v37   ;;  %1080 = vst [vmem:[%s1296_s8 + $0x78] sm:$0xff] %v1064_v38  }
 0x10a   : > { %1071 = vst [vmem:[%s1296_s8 + $0x30] sm:$0xff] %v1019_v39  }
 0x10b   : > { %1079 = vst [vmem:[%s1296_s8 + $0x70] sm:$0xff] %v1059_v40  }
 0x10c PF: > { %s14_s15 = sadd.s32 1, %s1179_s15  }
 0x10d   : > { %p11_p4 = scmp.ge.s32.totalorder %s14_s15, 4  }
 0x10f   :  { %13 = sbr.rel (!%p11_p4) target bundleno = 1 (0x1), region = 66 }

// kernel: _lambda_.6
= control target key start
LH: loop header
LB: loop body
LE: loop exit
PB: predicated region body
PF: predicated region fallthrough
CT: control target
= control target key end

     0   :  { %s1360_s18 = smov 0   ;;  %s1580_s0 = inlined_call_operand.vmem [shape: bf16[256,180], index: 0, kind: input, shape index: {}]   ;;  %s1581_s1 = inlined_call_operand.vmem [shape: bf16[256,180], index: 1, kind: input, shape index: {}]   ;;  %s1582_s2 = inlined_call_operand.vmem [shape: bf16[180,128], index: 2, kind: input, shape index: {}]   ;;  %s1583_s3 = inlined_call_operand.vmem [shape: f32[1,128], index: 3, kind: input, shape index: {}]   ;;  %s1584_s4 = inlined_call_operand.vmem [shape: f32[1,128], index: 4, kind: input, shape index: {}]   ;;  %s1585_s5 = inlined_call_operand.vmem [shape: bf16[256,128], index: 5, kind: output, shape index: {}]  }
   0x1 LB: > { %s1094_s19 = sadd.s32 4294967295, %s1327_s18   ;;  %p1098_p0 = scmp.ge.s32.totalorder %s1327_s18, 1  ;;  %s1327_s18 = sphi %s1360_s18, %s15_s18  }
   0x2   : > { %p201_p1 = scmp.lt.s32.totalorder %s1327_s18, 3 }
   0x4   : > { %p202_p2 = pnand %p1098_p0, %p201_p1 }
   0x5   : > { %v1261_v0 = vld [vmem:[%s1582_s2] sm:$0xff] (!%p202_p2)   ;;  %v1329_v1 = vmov (!%p202_p2), 0   ;;  %v1262_v2 = vld [vmem:[%s1582_s2 + $0x8] sm:$0xff] (!%p202_p2)   ;;  %s1099_s24 = sshll.u32 (!%p202_p2), %s1094_s19, 4  ;;  %v1263_v3 = vld [vmem:[%s1582_s2 + $0x10] sm:$0xff] (!%p202_p2)   ;;  %vm439_vm0 = vcmask (!%p202_p2), 424960  }
   0x6   : > { %205 = sbr.rel (%p202_p2) target bundleno = 340 (0x154), region = 40  ;;  %468 = vmatprep.subr.bf16.mxu0 (!%p202_p2), %v1329_v1  ;;  %737 = vmatprep.subr.bf16.mxu1 (!%p202_p2), %v1329_v1  ;;  %p237_p3 = scmp.lt.s32.totalorder (!%p202_p2), %s1099_s24, 31  ;;  %v1264_v4 = vld [vmem:[%s1582_s2 + $0x18] sm:$0xff] (!%p202_p2)   ;;  %v1265_v6 = vld [vmem:[%s1582_s2 + $0x20] sm:$0xff] (!%p202_p2)   ;;  %v1266_v8 = vld [vmem:[%s1582_s2 + $0x28] sm:$0xff] (!%p202_p2)   ;;  %vm464_vm1 = vcmask (!%p202_p2), 1041408  }
   0x7   : > { %469 = vmatpush1.bf16.msra.mxu0 (!%p202_p2), %v1261_v0  ;;  %738 = vmatpush1.bf16.msra.mxu1 (!%p202_p2), %v1261_v0  ;;  %v1267_v9 = vld [vmem:[%s1582_s2 + $0x30] sm:$0xff] (!%p202_p2)   ;;  %v1268_v10 = vld [vmem:[%s1582_s2 + $0x38] sm:$0xff] (!%p202_p2)   ;;  %v1269_v11 = vld [vmem:[%s1582_s2 + $0x40] sm:$0xff] (!%p202_p2)  }
   0x8   : > { %470 = vmatprep.subr.bf16.mxu0 (!%p202_p2), %v1329_v1  ;;  %739 = vmatprep.subr.bf16.mxu1 (!%p202_p2), %v1329_v1  ;;  %v1270_v12 = vld [vmem:[%s1582_s2 + $0x48] sm:$0xff] (!%p202_p2)   ;;  %v1271_v13 = vld [vmem:[%s1582_s2 + $0x50] sm:$0xff] (!%p202_p2)   ;;  %v1272_v14 = vld [vmem:[%s1582_s2 + $0x58] ss:$0 sps:$4 sm:$0x33] (!%p202_p2)  }
   0x9   : > { %v466_v15 = vsel (!%p202_p2), %vm464_vm1, %v1272_v14, 0  ;;  %v1492_v46 = vld [vmem:[%s1583_s3] ss:$0 sm:$0xff] (!%p202_p2) }
   0xa   : > { %v1497_v47 = vld [vmem:[%s1584_s4] ss:$0 sm:$0xff] (!%p202_p2) }
   0xb   : > { %471 = vmatpush1.bf16.msra.mxu0 (!%p202_p2), %v1262_v2  ;;  %740 = vmatpush1.bf16.msra.mxu1 (!%p202_p2), %v1262_v2 }
   0xc   : > { %472 = vmatprep.subr.bf16.mxu0 (!%p202_p2), %v1329_v1  ;;  %741 = vmatprep.subr.bf16.mxu1 (!%p202_p2), %v1329_v1 }
   0xd   : > { %s1587_s24 = smov (!%p237_p3, %s1099_s24), 31 }
   0xe   : > { %s1187_s27 = sshll.u32 %s1587_s24, 3 }
   0xf   : > { %s1389_s30 = scalar_lea.vmem %s1580_s0, %s1187_s27  ;;  %473 = vmatpush1.bf16.msra.mxu0 %v1263_v3  ;;  %742 = vmatpush1.bf16.msra.mxu1 %v1263_v3  ;;  %s1399_s10 = scalar_lea.vmem %s1581_s1, %s1187_s27 }
  0x10   : > { %474 = vmatprep.subr.bf16.mxu0 %v1329_v1  ;;  %743 = vmatprep.subr.bf16.mxu1 %v1329_v1  ;;  %v1275_v5 = vld [vmem:[%s1389_s30 + $0x4] ss:$8 sps:$4 sm:$0xff]   ;;  %v1273_v16 = vld [vmem:[%s1389_s30] ss:$8 sps:$4 sm:$0xff]   ;;  %v1279_v18 = vld [vmem:[%s1389_s30 + $0x14] ss:$8 sps:$4 sm:$0xff]  }
  0x11   : > { %v1278_v7 = vld [vmem:[%s1399_s10 + $0x4] ss:$8 sps:$4 sm:$0xff]   ;;  %1135 = vmatprep.mubr.msk.bf16.mxu0 %vm439_vm0, %v1275_v5  ;;  %v1276_v17 = vld [vmem:[%s1399_s10] ss:$8 sps:$4 sm:$0xff]   ;;  %v1281_v19 = vld [vmem:[%s1399_s10 + $0x14] ss:$8 sps:$4 sm:$0xff]  }
  0x12   : > { %1161 = vmatprep.mubr.msk.bf16.mxu1 %vm439_vm0, %v1278_v7  ;;  %v1283_v20 = vld [vmem:[%s1389_s30 + $0x10] ss:$8 sps:$4 sm:$0xff]   ;;  %v1285_v22 = vld [vmem:[%s1389_s30 + $0x24] ss:$8 sps:$4 sm:$0xff]   ;;  %v1289_v24 = vld [vmem:[%s1389_s30 + $0x20] ss:$8 sps:$4 sm:$0xff]  }
  0x13   : > { %475 = vmatpush1.bf16.msra.mxu0 %v1264_v4  ;;  %744 = vmatpush1.bf16.msra.mxu1 %v1264_v4  ;;  %v1284_v21 = vld [vmem:[%s1399_s10 + $0x10] ss:$8 sps:$4 sm:$0xff]   ;;  %v1287_v23 = vld [vmem:[%s1399_s10 + $0x24] ss:$8 sps:$4 sm:$0xff]   ;;  %v1290_v25 = vld [vmem:[%s1399_s10 + $0x20] ss:$8 sps:$4 sm:$0xff]  }
  0x14   : > { %476 = vmatprep.subr.bf16.mxu0 %v1329_v1  ;;  %745 = vmatprep.subr.bf16.mxu1 %v1329_v1  ;;  %v1291_v26 = vld [vmem:[%s1389_s30 + $0x34] ss:$8 sps:$4 sm:$0xff]   ;;  %v1295_v28 = vld [vmem:[%s1389_s30 + $0x30] ss:$8 sps:$4 sm:$0xff]   ;;  %v1297_v30 = vld [vmem:[%s1389_s30 + $0x44] ss:$8 sps:$4 sm:$0xff]  }
  0x15   : > { %v1293_v27 = vld [vmem:[%s1399_s10 + $0x34] ss:$8 sps:$4 sm:$0xff]   ;;  %v1296_v29 = vld [vmem:[%s1399_s10 + $0x30] ss:$8 sps:$4 sm:$0xff]   ;;  %v1299_v31 = vld [vmem:[%s1399_s10 + $0x44] ss:$8 sps:$4 sm:$0xff]  }
  0x16   : > { %v1301_v32 = vld [vmem:[%s1389_s30 + $0x40] ss:$8 sps:$4 sm:$0xff]   ;;  %v1303_v34 = vld [vmem:[%s1389_s30 + $0x54] ss:$8 sps:$4 sm:$0xff]   ;;  %v1307_v36 = vld [vmem:[%s1389_s30 + $0x50] ss:$8 sps:$4 sm:$0xff]  }
  0x17   : > { %477 = vmatpush1.bf16.msra.mxu0 %v1265_v6  ;;  %746 = vmatpush1.bf16.msra.mxu1 %v1265_v6  ;;  %v1302_v33 = vld [vmem:[%s1399_s10 + $0x40] ss:$8 sps:$4 sm:$0xff]   ;;  %v1305_v35 = vld [vmem:[%s1399_s10 + $0x54] ss:$8 sps:$4 sm:$0xff]   ;;  %v1308_v37 = vld [vmem:[%s1399_s10 + $0x50] ss:$8 sps:$4 sm:$0xff]  }
  0x18   : > { %478 = vmatprep.subr.bf16.mxu0 %v1329_v1  ;;  %747 = vmatprep.subr.bf16.mxu1 %v1329_v1  ;;  %v1309_v38 = vld [vmem:[%s1389_s30 + $0x64] ss:$8 sps:$4 sm:$0xff]   ;;  %v1313_v40 = vld [vmem:[%s1389_s30 + $0x60] ss:$8 sps:$4 sm:$0xff]   ;;  %v1315_v42 = vld [vmem:[%s1389_s30 + $0x74] ss:$8 sps:$4 sm:$0xff]  }
  0x19   : > { %v1311_v39 = vld [vmem:[%s1399_s10 + $0x64] ss:$8 sps:$4 sm:$0xff]   ;;  %v1314_v41 = vld [vmem:[%s1399_s10 + $0x60] ss:$8 sps:$4 sm:$0xff]   ;;  %v1317_v43 = vld [vmem:[%s1399_s10 + $0x74] ss:$8 sps:$4 sm:$0xff]  }
  0x1a   : > { %v1319_v44 = vld [vmem:[%s1389_s30 + $0x70] ss:$8 sps:$4 sm:$0xff]   ;;  %s1106_s30 = sshll.u32 %s1587_s24, 2 }
  0x1b   : > { %479 = vmatpush1.bf16.msra.mxu0 %v1266_v8  ;;  %748 = vmatpush1.bf16.msra.mxu1 %v1266_v8  ;;  %v1320_v45 = vld [vmem:[%s1399_s10 + $0x70] ss:$8 sps:$4 sm:$0xff]   ;;  %s1518_s11 = scalar_lea.vmem %s1585_s5, %s1106_s30 }
  0x1c   : > { %480 = vmatprep.subr.bf16.mxu0 %v1329_v1  ;;  %749 = vmatprep.subr.bf16.mxu1 %v1329_v1 }
  0x1f   : > { %481 = vmatpush1.bf16.msra.mxu0 %v1267_v9  ;;  %750 = vmatpush1.bf16.msra.mxu1 %v1267_v9 }
  0x20   : > { %482 = vmatprep.subr.bf16.mxu0 %v1329_v1  ;;  %751 = vmatprep.subr.bf16.mxu1 %v1329_v1 }
  0x23   : > { %483 = vmatpush1.bf16.msra.mxu0 %v1268_v10  ;;  %752 = vmatpush1.bf16.msra.mxu1 %v1268_v10 }
  0x24   : > { %484 = vmatprep.subr.bf16.mxu0 %v1329_v1  ;;  %753 = vmatprep.subr.bf16.mxu1 %v1329_v1 }
  0x27   : > { %485 = vmatpush1.bf16.msra.mxu0 %v1269_v11  ;;  %754 = vmatpush1.bf16.msra.mxu1 %v1269_v11 }
  0x28   : > { %486 = vmatprep.subr.bf16.mxu0 %v1329_v1  ;;  %755 = vmatprep.subr.bf16.mxu1 %v1329_v1 }
  0x2b   : > { %487 = vmatpush1.bf16.msra.mxu0 %v1270_v12  ;;  %756 = vmatpush1.bf16.msra.mxu1 %v1270_v12 }
  0x2c   : > { %488 = vmatprep.subr.bf16.mxu0 %v1329_v1  ;;  %757 = vmatprep.subr.bf16.mxu1 %v1329_v1 }
  0x2f   : > { %489 = vmatpush1.bf16.msra.mxu0 %v1271_v13  ;;  %758 = vmatpush1.bf16.msra.mxu1 %v1271_v13 }
  0x30   : > { %490 = vmatprep.subr.bf16.mxu0 %v1329_v1  ;;  %759 = vmatprep.subr.bf16.mxu1 %v1329_v1 }
  0x33   : > { %491 = vmatpush1.bf16.msra.mxu0 %v466_v15  ;;  %760 = vmatpush1.bf16.msra.mxu1 %v466_v15 }
  0x36   : > { %501 = vmatmul.mubr.bf16.vlgmr.msra.gmra.mrb[0].mxu0 %v1273_v16  ;;  %770 = vmatmul.mubr.bf16.vlgmr.msra.gmra.mrb[0].mxu1 %v1276_v17 }
  0x37   : > { %1136 = vmatprep.mubr.msk.bf16.mxu0 %vm439_vm0, %v1279_v18  ;;  %1162 = vmatprep.mubr.msk.bf16.mxu1 %vm439_vm0, %v1281_v19 }
  0x3e   : > { %509 = vmatmul.mubr.bf16.gmra.mrb[4].mxu0 %v1283_v20  ;;  %778 = vmatmul.mubr.bf16.gmra.mrb[4].mxu1 %v1284_v21 }
  0x3f   : > { %1137 = vmatprep.mubr.msk.bf16.mxu0 %vm439_vm0, %v1285_v22  ;;  %1163 = vmatprep.mubr.msk.bf16.mxu1 %vm439_vm0, %v1287_v23 }
  0x46   : > { %517 = vmatmul.mubr.bf16.gmra.mrb[8].mxu0 %v1289_v24  ;;  %786 = vmatmul.mubr.bf16.gmra.mrb[8].mxu1 %v1290_v25 }
  0x47   : > { %1138 = vmatprep.mubr.msk.bf16.mxu0 %vm439_vm0, %v1291_v26  ;;  %1164 = vmatprep.mubr.msk.bf16.mxu1 %vm439_vm0, %v1293_v27 }
  0x4e   : > { %525 = vmatmul.mubr.bf16.gmra.mrb[12].mxu0 %v1295_v28  ;;  %794 = vmatmul.mubr.bf16.gmra.mrb[12].mxu1 %v1296_v29 }
  0x4f   : > { %1139 = vmatprep.mubr.msk.bf16.mxu0 %vm439_vm0, %v1297_v30  ;;  %1165 = vmatprep.mubr.msk.bf16.mxu1 %vm439_vm0, %v1299_v31 }
  0x56   : > { %533 = vmatmul.mubr.bf16.gmra.mrb[16].mxu0 %v1301_v32  ;;  %802 = vmatmul.mubr.bf16.gmra.mrb[16].mxu1 %v1302_v33 }
  0x57   : > { %1140 = vmatprep.mubr.msk.bf16.mxu0 %vm439_vm0, %v1303_v34  ;;  %1166 = vmatprep.mubr.msk.bf16.mxu1 %vm439_vm0, %v1305_v35 }
  0x5e   : > { %541 = vmatmul.mubr.bf16.gmra.mrb[20].mxu0 %v1307_v36  ;;  %810 = vmatmul.mubr.bf16.gmra.mrb[20].mxu1 %v1308_v37 }
  0x5f   : > { %1141 = vmatprep.mubr.msk.bf16.mxu0 %vm439_vm0, %v1309_v38  ;;  %1167 = vmatprep.mubr.msk.bf16.mxu1 %vm439_vm0, %v1311_v39 }
  0x66   : > { %549 = vmatmul.mubr.bf16.gmra.mrb[24].mxu0 %v1313_v40  ;;  %818 = vmatmul.mubr.bf16.gmra.mrb[24].mxu1 %v1314_v41 }
  0x67   : > { %1142 = vmatprep.mubr.msk.bf16.mxu0 %vm439_vm0, %v1315_v42  ;;  %1168 = vmatprep.mubr.msk.bf16.mxu1 %vm439_vm0, %v1317_v43 }
  0x6e   : > { %557 = vmatmul.mubr.bf16.gmra.mrb[28].mxu0 %v1319_v44  ;;  %826 = vmatmul.mubr.bf16.gmra.mrb[28].mxu1 %v1320_v45 }
 0x109   : > { %v502_v48 = vpop.f32.mrb[0].mxu0  ;;  %v771_v49 = vpop.f32.mrb[0].mxu1 }
 0x10a   : > { %v571_v50 = vmul.f32 %v1492_v46, %v502_v48  ;;  %v834_v51 = vmul.f32 %v1492_v46, %v771_v49  ;;  %v504_v52 = vpop.f32.mrb[1].mxu0  ;;  %v773_v53 = vpop.f32.mrb[1].mxu1 }
 0x10b   : > { %v505_v54 = vpop.f32.mrb[2].mxu0  ;;  %v774_v55 = vpop.f32.mrb[2].mxu1 }
 0x10c   : > { %v593_v56 = vadd.f32 %v1497_v47, %v571_v50  ;;  %v850_v57 = vadd.f32 %v1497_v47, %v834_v51  ;;  %v572_v58 = vmul.f32 %v1492_v46, %v505_v54  ;;  %v835_v59 = vmul.f32 %v1492_v46, %v774_v55  ;;  %v507_v60 = vpop.f32.mrb[3].mxu0  ;;  %v776_v61 = vpop.f32.mrb[3].mxu1 }
 0x10e   : > { %v609_v62 = vmax.f32 %v593_v56, 0.0  ;;  %v866_v63 = vmax.f32 %v850_v57, 0.0  ;;  %v594_v0 = vadd.f32 %v1497_v47, %v572_v58  ;;  %v851_v1 = vadd.f32 %v1497_v47, %v835_v59 }
 0x110   : > { %v882_v2 = vadd.f32 %v866_v63, %v609_v62  ;;  %v914_v3 = vmax.f32 %v609_v62, %v866_v63  ;;  %v610_v4 = vmax.f32 %v594_v0, 0.0  ;;  %v867_v5 = vmax.f32 %v851_v1, 0.0 }
 0x111   : > { %v510_v6 = vpop.f32.mrb[4].mxu0  ;;  %v779_v7 = vpop.f32.mrb[4].mxu1 }
 0x112   : > { %v898_v8 = vmul.f32 0.5, %v882_v2  ;;  %v883_v9 = vadd.f32 %v867_v5, %v610_v4  ;;  %v915_v10 = vmax.f32 %v610_v4, %v867_v5  ;;  %v573_v11 = vmul.f32 %v1492_v46, %v510_v6  ;;  %v512_v12 = vpop.f32.mrb[5].mxu0  ;;  %v781_v13 = vpop.f32.mrb[5].mxu1 }
 0x113   : > { %v836_v14 = vmul.f32 %v1492_v46, %v779_v7  ;;  %v513_v15 = vpop.f32.mrb[6].mxu0  ;;  %v782_v16 = vpop.f32.mrb[6].mxu1 }
 0x114   : > { %v930_v17 = vadd.f32 %v914_v3, %v898_v8  ;;  %v899_v18 = vmul.f32 0.5, %v883_v9  ;;  %v595_v19 = vadd.f32 %v1497_v47, %v573_v11  ;;  %v574_v20 = vmul.f32 %v1492_v46, %v513_v15  ;;  %v515_v21 = vpop.f32.mrb[7].mxu0  ;;  %v784_v22 = vpop.f32.mrb[7].mxu1 }
 0x115   : > { %v852_v23 = vadd.f32 %v1497_v47, %v836_v14  ;;  %v837_v24 = vmul.f32 %v1492_v46, %v782_v16 }
 0x116   : > { %v931_v25 = vadd.f32 %v915_v10, %v899_v18  ;;  %v611_v26 = vmax.f32 %v595_v19, 0.0  ;;  %v596_v27 = vadd.f32 %v1497_v47, %v574_v20 }
 0x117   : > { %v868_v28 = vmax.f32 %v852_v23, 0.0  ;;  %v853_v29 = vadd.f32 %v1497_v47, %v837_v24 }
 0x118   : > { %v1208_v30 = vpack.c.bf16 %v931_v25, %v930_v17  ;;  %v612_v31 = vmax.f32 %v596_v27, 0.0 }
 0x119   : > { %v884_v32 = vadd.f32 %v868_v28, %v611_v26  ;;  %v916_v33 = vmax.f32 %v611_v26, %v868_v28  ;;  %v869_v34 = vmax.f32 %v853_v29, 0.0  ;;  %v518_v35 = vpop.f32.mrb[8].mxu0  ;;  %v787_v36 = vpop.f32.mrb[8].mxu1 }
 0x11a   : > { %1209 = vst [vmem:[%s1518_s11] sm:$0xff] %v1208_v30   ;;  %v575_v37 = vmul.f32 %v1492_v46, %v518_v35  ;;  %v838_v38 = vmul.f32 %v1492_v46, %v787_v36  ;;  %v520_v39 = vpop.f32.mrb[9].mxu0  ;;  %v789_v40 = vpop.f32.mrb[9].mxu1 }
 0x11b   : > { %v900_v41 = vmul.f32 0.5, %v884_v32  ;;  %v885_v42 = vadd.f32 %v869_v34, %v612_v31  ;;  %v917_v43 = vmax.f32 %v612_v31, %v869_v34  ;;  %v521_v44 = vpop.f32.mrb[10].mxu0  ;;  %v790_v45 = vpop.f32.mrb[10].mxu1 }
 0x11c   : > { %v597_v48 = vadd.f32 %v1497_v47, %v575_v37  ;;  %v854_v49 = vadd.f32 %v1497_v47, %v838_v38  ;;  %v576_v50 = vmul.f32 %v1492_v46, %v521_v44  ;;  %v839_v51 = vmul.f32 %v1492_v46, %v790_v45  ;;  %v523_v52 = vpop.f32.mrb[11].mxu0  ;;  %v792_v53 = vpop.f32.mrb[11].mxu1 }
 0x11d   : > { %v932_v54 = vadd.f32 %v916_v33, %v900_v41  ;;  %v901_v55 = vmul.f32 0.5, %v885_v42 }
 0x11e   : > { %v613_v56 = vmax.f32 %v597_v48, 0.0  ;;  %v870_v57 = vmax.f32 %v854_v49, 0.0  ;;  %v598_v58 = vadd.f32 %v1497_v47, %v576_v50  ;;  %v855_v59 = vadd.f32 %v1497_v47, %v839_v51 }
 0x11f   : > { %v933_v60 = vadd.f32 %v917_v43, %v901_v55 }
 0x120   : > { %v886_v61 = vadd.f32 %v870_v57, %v613_v56  ;;  %v918_v62 = vmax.f32 %v613_v56, %v870_v57  ;;  %v614_v63 = vmax.f32 %v598_v58, 0.0  ;;  %v871_v0 = vmax.f32 %v855_v59, 0.0 }
 0x121   : > { %v1213_v1 = vpack.c.bf16 %v933_v60, %v932_v54  ;;  %v526_v2 = vpop.f32.mrb[12].mxu0  ;;  %v795_v3 = vpop.f32.mrb[12].mxu1 }
 0x122   : > { %v902_v4 = vmul.f32 0.5, %v886_v61  ;;  %v887_v5 = vadd.f32 %v871_v0, %v614_v63  ;;  %v919_v6 = vmax.f32 %v614_v63, %v871_v0  ;;  %v577_v7 = vmul.f32 %v1492_v46, %v526_v2  ;;  %v528_v8 = vpop.f32.mrb[13].mxu0  ;;  %v797_v9 = vpop.f32.mrb[13].mxu1 }
 0x123   : > { %1245 = vst [vmem:[%s1518_s11 + $0x8] sm:$0xff] %v1213_v1   ;;  %v840_v10 = vmul.f32 %v1492_v46, %v795_v3  ;;  %v529_v11 = vpop.f32.mrb[14].mxu0  ;;  %v798_v12 = vpop.f32.mrb[14].mxu1 }
 0x124   : > { %v934_v13 = vadd.f32 %v918_v62, %v902_v4  ;;  %v903_v14 = vmul.f32 0.5, %v887_v5  ;;  %v599_v15 = vadd.f32 %v1497_v47, %v577_v7  ;;  %v578_v16 = vmul.f32 %v1492_v46, %v529_v11  ;;  %v531_v17 = vpop.f32.mrb[15].mxu0  ;;  %v800_v18 = vpop.f32.mrb[15].mxu1 }
 0x125   : > { %v856_v19 = vadd.f32 %v1497_v47, %v840_v10  ;;  %v841_v20 = vmul.f32 %v1492_v46, %v798_v12 }
 0x126   : > { %v935_v21 = vadd.f32 %v919_v6, %v903_v14  ;;  %v615_v22 = vmax.f32 %v599_v15, 0.0  ;;  %v600_v23 = vadd.f32 %v1497_v47, %v578_v16 }
 0x127   : > { %v872_v24 = vmax.f32 %v856_v19, 0.0  ;;  %v857_v25 = vadd.f32 %v1497_v47, %v841_v20 }
 0x128   : > { %v1218_v26 = vpack.c.bf16 %v935_v21, %v934_v13  ;;  %v616_v27 = vmax.f32 %v600_v23, 0.0 }
 0x129   : > { %v888_v28 = vadd.f32 %v872_v24, %v615_v22  ;;  %v920_v29 = vmax.f32 %v615_v22, %v872_v24  ;;  %v873_v30 = vmax.f32 %v857_v25, 0.0  ;;  %v534_v31 = vpop.f32.mrb[16].mxu0  ;;  %v803_v32 = vpop.f32.mrb[16].mxu1 }
 0x12a   : > { %1246 = vst [vmem:[%s1518_s11 + $0x10] sm:$0xff] %v1218_v26   ;;  %v579_v33 = vmul.f32 %v1492_v46, %v534_v31  ;;  %v842_v34 = vmul.f32 %v1492_v46, %v803_v32  ;;  %v536_v35 = vpop.f32.mrb[17].mxu0  ;;  %v805_v36 = vpop.f32.mrb[17].mxu1 }
 0x12b   : > { %v904_v37 = vmul.f32 0.5, %v888_v28  ;;  %v889_v38 = vadd.f32 %v873_v30, %v616_v27  ;;  %v921_v39 = vmax.f32 %v616_v27, %v873_v30  ;;  %v537_v40 = vpop.f32.mrb[18].mxu0  ;;  %v806_v41 = vpop.f32.mrb[18].mxu1 }
 0x12c   : > { %v601_v42 = vadd.f32 %v1497_v47, %v579_v33  ;;  %v858_v43 = vadd.f32 %v1497_v47, %v842_v34  ;;  %v580_v44 = vmul.f32 %v1492_v46, %v537_v40  ;;  %v843_v45 = vmul.f32 %v1492_v46, %v806_v41  ;;  %v539_v48 = vpop.f32.mrb[19].mxu0  ;;  %v808_v49 = vpop.f32.mrb[19].mxu1 }
 0x12d   : > { %v936_v50 = vadd.f32 %v920_v29, %v904_v37  ;;  %v905_v51 = vmul.f32 0.5, %v889_v38 }
 0x12e   : > { %v617_v52 = vmax.f32 %v601_v42, 0.0  ;;  %v874_v53 = vmax.f32 %v858_v43, 0.0  ;;  %v602_v54 = vadd.f32 %v1497_v47, %v580_v44  ;;  %v859_v55 = vadd.f32 %v1497_v47, %v843_v45 }
 0x12f   : > { %v937_v56 = vadd.f32 %v921_v39, %v905_v51 }
 0x130   : > { %v890_v57 = vadd.f32 %v874_v53, %v617_v52  ;;  %v922_v58 = vmax.f32 %v617_v52, %v874_v53  ;;  %v618_v59 = vmax.f32 %v602_v54, 0.0  ;;  %v875_v60 = vmax.f32 %v859_v55, 0.0 }
 0x131   : > { %v1223_v61 = vpack.c.bf16 %v937_v56, %v936_v50  ;;  %v542_v62 = vpop.f32.mrb[20].mxu0  ;;  %v811_v63 = vpop.f32.mrb[20].mxu1 }
 0x132   : > { %v906_v0 = vmul.f32 0.5, %v890_v57  ;;  %v891_v1 = vadd.f32 %v875_v60, %v618_v59  ;;  %v923_v2 = vmax.f32 %v618_v59, %v875_v60  ;;  %v581_v3 = vmul.f32 %v1492_v46, %v542_v62  ;;  %v544_v4 = vpop.f32.mrb[21].mxu0  ;;  %v813_v5 = vpop.f32.mrb[21].mxu1 }
 0x133   : > { %1247 = vst [vmem:[%s1518_s11 + $0x18] sm:$0xff] %v1223_v61   ;;  %v844_v6 = vmul.f32 %v1492_v46, %v811_v63  ;;  %v545_v7 = vpop.f32.mrb[22].mxu0  ;;  %v814_v8 = vpop.f32.mrb[22].mxu1 }
 0x134   : > { %v938_v9 = vadd.f32 %v922_v58, %v906_v0  ;;  %v907_v10 = vmul.f32 0.5, %v891_v1  ;;  %v603_v11 = vadd.f32 %v1497_v47, %v581_v3  ;;  %v582_v12 = vmul.f32 %v1492_v46, %v545_v7  ;;  %v547_v13 = vpop.f32.mrb[23].mxu0  ;;  %v816_v14 = vpop.f32.mrb[23].mxu1 }
 0x135   : > { %v860_v15 = vadd.f32 %v1497_v47, %v844_v6  ;;  %v845_v16 = vmul.f32 %v1492_v46, %v814_v8 }
 0x136   : > { %v939_v17 = vadd.f32 %v923_v2, %v907_v10  ;;  %v619_v18 = vmax.f32 %v603_v11, 0.0  ;;  %v604_v19 = vadd.f32 %v1497_v47, %v582_v12 }
 0x137   : > { %v876_v20 = vmax.f32 %v860_v15, 0.0  ;;  %v861_v21 = vadd.f32 %v1497_v47, %v845_v16 }
 0x138   : > { %v1228_v22 = vpack.c.bf16 %v939_v17, %v938_v9  ;;  %v620_v23 = vmax.f32 %v604_v19, 0.0 }
 0x139   : > { %v892_v24 = vadd.f32 %v876_v20, %v619_v18  ;;  %v924_v25 = vmax.f32 %v619_v18, %v876_v20  ;;  %v877_v26 = vmax.f32 %v861_v21, 0.0  ;;  %v550_v27 = vpop.f32.mrb[24].mxu0  ;;  %v819_v28 = vpop.f32.mrb[24].mxu1 }
 0x13a   : > { %1248 = vst [vmem:[%s1518_s11 + $0x20] sm:$0xff] %v1228_v22   ;;  %v583_v29 = vmul.f32 %v1492_v46, %v550_v27  ;;  %v846_v30 = vmul.f32 %v1492_v46, %v819_v28  ;;  %v552_v31 = vpop.f32.mrb[25].mxu0  ;;  %v821_v32 = vpop.f32.mrb[25].mxu1 }
 0x13b   : > { %v908_v33 = vmul.f32 0.5, %v892_v24  ;;  %v893_v34 = vadd.f32 %v877_v26, %v620_v23  ;;  %v925_v35 = vmax.f32 %v620_v23, %v877_v26  ;;  %v553_v36 = vpop.f32.mrb[26].mxu0  ;;  %v822_v37 = vpop.f32.mrb[26].mxu1 }
 0x13c   : > { %v605_v38 = vadd.f32 %v1497_v47, %v583_v29  ;;  %v862_v39 = vadd.f32 %v1497_v47, %v846_v30  ;;  %v584_v40 = vmul.f32 %v1492_v46, %v553_v36  ;;  %v847_v41 = vmul.f32 %v1492_v46, %v822_v37  ;;  %v555_v42 = vpop.f32.mrb[27].mxu0  ;;  %v824_v43 = vpop.f32.mrb[27].mxu1 }
 0x13d   : > { %v940_v44 = vadd.f32 %v924_v25, %v908_v33  ;;  %v909_v45 = vmul.f32 0.5, %v893_v34 }
 0x13e   : > { %v621_v48 = vmax.f32 %v605_v38, 0.0  ;;  %v878_v49 = vmax.f32 %v862_v39, 0.0  ;;  %v606_v50 = vadd.f32 %v1497_v47, %v584_v40  ;;  %v863_v51 = vadd.f32 %v1497_v47, %v847_v41 }
 0x13f   : > { %v941_v52 = vadd.f32 %v925_v35, %v909_v45 }
 0x140   : > { %v894_v53 = vadd.f32 %v878_v49, %v621_v48  ;;  %v926_v54 = vmax.f32 %v621_v48, %v878_v49  ;;  %v622_v55 = vmax.f32 %v606_v50, 0.0  ;;  %v879_v56 = vmax.f32 %v863_v51, 0.0 }
 0x141   : > { %v1233_v57 = vpack.c.bf16 %v941_v52, %v940_v44  ;;  %v558_v58 = vpop.f32.mrb[28].mxu0  ;;  %v827_v59 = vpop.f32.mrb[28].mxu1 }
 0x142   : > { %v910_v60 = vmul.f32 0.5, %v894_v53  ;;  %v895_v61 = vadd.f32 %v879_v56, %v622_v55  ;;  %v927_v62 = vmax.f32 %v622_v55, %v879_v56  ;;  %v585_v63 = vmul.f32 %v1492_v46, %v558_v58  ;;  %v560_v0 = vpop.f32.mrb[29].mxu0  ;;  %v829_v1 = vpop.f32.mrb[29].mxu1 }
 0x143   : > { %1249 = vst [vmem:[%s1518_s11 + $0x28] sm:$0xff] %v1233_v57   ;;  %v848_v2 = vmul.f32 %v1492_v46, %v827_v59  ;;  %v561_v3 = vpop.f32.mrb[30].mxu0  ;;  %v830_v4 = vpop.f32.mrb[30].mxu1 }
 0x144   : > { %v942_v5 = vadd.f32 %v926_v54, %v910_v60  ;;  %v911_v6 = vmul.f32 0.5, %v895_v61  ;;  %v607_v7 = vadd.f32 %v1497_v47, %v585_v63  ;;  %v586_v8 = vmul.f32 %v1492_v46, %v561_v3  ;;  %v563_v9 = vpop.f32.mrb[31].mxu0  ;;  %v832_v10 = vpop.f32.mrb[31].mxu1 }
 0x145   : > { %v864_v11 = vadd.f32 %v1497_v47, %v848_v2  ;;  %v849_v12 = vmul.f32 %v1492_v46, %v830_v4 }
 0x146   : > { %v943_v13 = vadd.f32 %v927_v62, %v911_v6  ;;  %v623_v14 = vmax.f32 %v607_v7, 0.0  ;;  %v608_v15 = vadd.f32 %v1497_v47, %v586_v8 }
 0x147   : > { %v880_v16 = vmax.f32 %v864_v11, 0.0  ;;  %v865_v17 = vadd.f32 %v1497_v47, %v849_v12 }
 0x148   : > { %v1238_v18 = vpack.c.bf16 %v943_v13, %v942_v5  ;;  %v624_v19 = vmax.f32 %v608_v15, 0.0 }
 0x149   : > { %v896_v20 = vadd.f32 %v880_v16, %v623_v14  ;;  %v928_v21 = vmax.f32 %v623_v14, %v880_v16  ;;  %v881_v22 = vmax.f32 %v865_v17, 0.0 }
 0x14a   : > { %1250 = vst [vmem:[%s1518_s11 + $0x30] sm:$0xff] %v1238_v18  }
 0x14b   : > { %v912_v23 = vmul.f32 0.5, %v896_v20  ;;  %v897_v24 = vadd.f32 %v881_v22, %v624_v19  ;;  %v929_v25 = vmax.f32 %v624_v19, %v881_v22 }
 0x14d   : > { %v944_v26 = vadd.f32 %v928_v21, %v912_v23  ;;  %v913_v27 = vmul.f32 0.5, %v897_v24 }
 0x14f   : > { %v945_v46 = vadd.f32 %v929_v25, %v913_v27 }
 0x151   : > { %v1243_v28 = vpack.c.bf16 %v945_v46, %v944_v26 }
 0x153   : > { %1251 = vst [vmem:[%s1518_s11 + $0x38] sm:$0xff] %v1243_v28  }
 0x154 PF: > { %s15_s18 = sadd.s32 1, %s1327_s18  }
 0x155   : > { %p12_p4 = scmp.ge.s32.totalorder %s15_s18, 4  }
 0x157   :  { %14 = sbr.rel (!%p12_p4) target bundleno = 1 (0x1), region = 73 }

// kernel: _lambda_.7
= control target key start
LH: loop header
LB: loop body
LE: loop exit
PB: predicated region body
PF: predicated region fallthrough
CT: control target
= control target key end

     0   :  { %s942_s15 = smov 0   ;;  %s1101_s0 = inlined_call_operand.vmem [shape: bf16[256,180], index: 0, kind: input, shape index: {}]   ;;  %s1102_s1 = inlined_call_operand.vmem [shape: bf16[180,128], index: 1, kind: input, shape index: {}]   ;;  %s1103_s2 = inlined_call_operand.vmem [shape: f32[1,128], index: 2, kind: input, shape index: {}]   ;;  %s1104_s3 = inlined_call_operand.vmem [shape: f32[1,128], index: 3, kind: input, shape index: {}]   ;;  %s1105_s4 = inlined_call_operand.vmem [shape: bf16[256,128], index: 4, kind: output, shape index: {}]  }
   0x1 LB: > { %s709_s16 = sadd.s32 4294967295, %s914_s15   ;;  %p713_p0 = scmp.ge.s32.totalorder %s914_s15, 1  ;;  %s914_s15 = sphi %s942_s15, %s14_s15  }
   0x2   : > { %p164_p1 = scmp.lt.s32.totalorder %s914_s15, 3 }
   0x4   : > { %p165_p2 = pnand %p713_p0, %p164_p1 }
   0x5   : > { %v872_v0 = vld [vmem:[%s1102_s1] sm:$0xff] (!%p165_p2)   ;;  %v916_v1 = vmov (!%p165_p2), 0   ;;  %v873_v2 = vld [vmem:[%s1102_s1 + $0x8] sm:$0xff] (!%p165_p2)   ;;  %s714_s21 = sshll.u32 (!%p165_p2), %s709_s16, 4  ;;  %v874_v3 = vld [vmem:[%s1102_s1 + $0x10] sm:$0xff] (!%p165_p2)   ;;  %vm385_vm0 = vcmask (!%p165_p2), 424960  }
   0x6   : > { %168 = sbr.rel (%p165_p2) target bundleno = 302 (0x12e), region = 36  ;;  %414 = vmatprep.subr.bf16.mxu0 (!%p165_p2), %v916_v1  ;;  %839 = vmatprep.subr.bf16.mxu1 (!%p165_p2), %v916_v1  ;;  %p192_p3 = scmp.lt.s32.totalorder (!%p165_p2), %s714_s21, 31  ;;  %v875_v4 = vld [vmem:[%s1102_s1 + $0x18] sm:$0xff] (!%p165_p2)   ;;  %v876_v6 = vld [vmem:[%s1102_s1 + $0x20] sm:$0xff] (!%p165_p2)   ;;  %v877_v8 = vld [vmem:[%s1102_s1 + $0x28] sm:$0xff] (!%p165_p2)   ;;  %vm410_vm1 = vcmask (!%p165_p2), 1041408  }
   0x7   : > { %415 = vmatpush1.bf16.msra.mxu0 (!%p165_p2), %v872_v0  ;;  %851 = vmatpush1.bf16.msra.mxu1 (!%p165_p2), %v872_v0  ;;  %v878_v9 = vld [vmem:[%s1102_s1 + $0x30] sm:$0xff] (!%p165_p2)   ;;  %v879_v10 = vld [vmem:[%s1102_s1 + $0x38] sm:$0xff] (!%p165_p2)   ;;  %v880_v11 = vld [vmem:[%s1102_s1 + $0x40] sm:$0xff] (!%p165_p2)  }
   0x8   : > { %416 = vmatprep.subr.bf16.mxu0 (!%p165_p2), %v916_v1  ;;  %840 = vmatprep.subr.bf16.mxu1 (!%p165_p2), %v916_v1  ;;  %v881_v12 = vld [vmem:[%s1102_s1 + $0x48] sm:$0xff] (!%p165_p2)   ;;  %v882_v13 = vld [vmem:[%s1102_s1 + $0x50] sm:$0xff] (!%p165_p2)   ;;  %v883_v14 = vld [vmem:[%s1102_s1 + $0x58] ss:$0 sps:$4 sm:$0x33] (!%p165_p2)  }
   0x9   : > { %v412_v15 = vsel (!%p165_p2), %vm410_vm1, %v883_v14, 0  ;;  %v1045_v30 = vld [vmem:[%s1103_s2] ss:$0 sm:$0xff] (!%p165_p2) }
   0xa   : > { %v1050_v32 = vld [vmem:[%s1104_s3] ss:$0 sm:$0xff] (!%p165_p2) }
   0xb   : > { %417 = vmatpush1.bf16.msra.mxu0 (!%p165_p2), %v873_v2  ;;  %852 = vmatpush1.bf16.msra.mxu1 (!%p165_p2), %v873_v2 }
   0xc   : > { %418 = vmatprep.subr.bf16.mxu0 (!%p165_p2), %v916_v1  ;;  %841 = vmatprep.subr.bf16.mxu1 (!%p165_p2), %v916_v1 }
   0xd   : > { %s1107_s21 = smov (!%p192_p3, %s714_s21), 31 }
   0xe   : > { %s775_s24 = sshll.u32 %s1107_s21, 3  ;;  %s718_s26 = sshll.u32 %s1107_s21, 2 }
   0xf   : > { %s971_s27 = scalar_lea.vmem %s1101_s0, %s775_s24  ;;  %419 = vmatpush1.bf16.msra.mxu0 %v874_v3  ;;  %853 = vmatpush1.bf16.msra.mxu1 %v874_v3  ;;  %s1064_s29 = scalar_lea.vmem %s1105_s4, %s718_s26 }
  0x10   : > { %420 = vmatprep.subr.bf16.mxu0 %v916_v1  ;;  %842 = vmatprep.subr.bf16.mxu1 %v916_v1  ;;  %v886_v5 = vld [vmem:[%s971_s27 + $0x4] ss:$8 sps:$4 sm:$0xff]   ;;  %v884_v16 = vld [vmem:[%s971_s27] ss:$8 sps:$4 sm:$0xff]   ;;  %v890_v18 = vld [vmem:[%s971_s27 + $0x14] ss:$8 sps:$4 sm:$0xff]  }
  0x11   : > { %v889_v7 = vld [vmem:[%s971_s27 + $0x44] ss:$8 sps:$4 sm:$0xff]   ;;  %747 = vmatprep.mubr.msk.bf16.mxu0 %vm385_vm0, %v886_v5  ;;  %v887_v17 = vld [vmem:[%s971_s27 + $0x40] ss:$8 sps:$4 sm:$0xff]   ;;  %v892_v19 = vld [vmem:[%s971_s27 + $0x54] ss:$8 sps:$4 sm:$0xff]  }
  0x12   : > { %751 = vmatprep.mubr.msk.bf16.mxu1 %vm385_vm0, %v889_v7  ;;  %v894_v20 = vld [vmem:[%s971_s27 + $0x10] ss:$8 sps:$4 sm:$0xff]   ;;  %v896_v22 = vld [vmem:[%s971_s27 + $0x24] ss:$8 sps:$4 sm:$0xff]   ;;  %v900_v24 = vld [vmem:[%s971_s27 + $0x20] ss:$8 sps:$4 sm:$0xff]  }
  0x13   : > { %421 = vmatpush1.bf16.msra.mxu0 %v875_v4  ;;  %854 = vmatpush1.bf16.msra.mxu1 %v875_v4  ;;  %v895_v21 = vld [vmem:[%s971_s27 + $0x50] ss:$8 sps:$4 sm:$0xff]   ;;  %v898_v23 = vld [vmem:[%s971_s27 + $0x64] ss:$8 sps:$4 sm:$0xff]   ;;  %v901_v25 = vld [vmem:[%s971_s27 + $0x60] ss:$8 sps:$4 sm:$0xff]  }
  0x14   : > { %422 = vmatprep.subr.bf16.mxu0 %v916_v1  ;;  %843 = vmatprep.subr.bf16.mxu1 %v916_v1  ;;  %v902_v26 = vld [vmem:[%s971_s27 + $0x34] ss:$8 sps:$4 sm:$0xff]   ;;  %v906_v28 = vld [vmem:[%s971_s27 + $0x30] ss:$8 sps:$4 sm:$0xff]  }
  0x15   : > { %v904_v27 = vld [vmem:[%s971_s27 + $0x74] ss:$8 sps:$4 sm:$0xff]   ;;  %v907_v29 = vld [vmem:[%s971_s27 + $0x70] ss:$8 sps:$4 sm:$0xff]  }
  0x17   : > { %423 = vmatpush1.bf16.msra.mxu0 %v876_v6  ;;  %855 = vmatpush1.bf16.msra.mxu1 %v876_v6 }
  0x18   : > { %424 = vmatprep.subr.bf16.mxu0 %v916_v1  ;;  %844 = vmatprep.subr.bf16.mxu1 %v916_v1 }
  0x1b   : > { %425 = vmatpush1.bf16.msra.mxu0 %v877_v8  ;;  %856 = vmatpush1.bf16.msra.mxu1 %v877_v8 }
  0x1c   : > { %426 = vmatprep.subr.bf16.mxu0 %v916_v1  ;;  %845 = vmatprep.subr.bf16.mxu1 %v916_v1 }
  0x1f   : > { %427 = vmatpush1.bf16.msra.mxu0 %v878_v9  ;;  %857 = vmatpush1.bf16.msra.mxu1 %v878_v9 }
  0x20   : > { %428 = vmatprep.subr.bf16.mxu0 %v916_v1  ;;  %846 = vmatprep.subr.bf16.mxu1 %v916_v1 }
  0x23   : > { %429 = vmatpush1.bf16.msra.mxu0 %v879_v10  ;;  %858 = vmatpush1.bf16.msra.mxu1 %v879_v10 }
  0x24   : > { %430 = vmatprep.subr.bf16.mxu0 %v916_v1  ;;  %847 = vmatprep.subr.bf16.mxu1 %v916_v1 }
  0x27   : > { %431 = vmatpush1.bf16.msra.mxu0 %v880_v11  ;;  %859 = vmatpush1.bf16.msra.mxu1 %v880_v11 }
  0x28   : > { %432 = vmatprep.subr.bf16.mxu0 %v916_v1  ;;  %848 = vmatprep.subr.bf16.mxu1 %v916_v1 }
  0x2b   : > { %433 = vmatpush1.bf16.msra.mxu0 %v881_v12  ;;  %860 = vmatpush1.bf16.msra.mxu1 %v881_v12 }
  0x2c   : > { %434 = vmatprep.subr.bf16.mxu0 %v916_v1  ;;  %849 = vmatprep.subr.bf16.mxu1 %v916_v1 }
  0x2f   : > { %435 = vmatpush1.bf16.msra.mxu0 %v882_v13  ;;  %861 = vmatpush1.bf16.msra.mxu1 %v882_v13 }
  0x30   : > { %436 = vmatprep.subr.bf16.mxu0 %v916_v1  ;;  %850 = vmatprep.subr.bf16.mxu1 %v916_v1 }
  0x33   : > { %437 = vmatpush1.bf16.msra.mxu0 %v412_v15  ;;  %862 = vmatpush1.bf16.msra.mxu1 %v412_v15 }
  0x36   : > { %447 = vmatmul.mubr.bf16.vlgmr.msra.gmra.mrb[0].mxu0 %v884_v16  ;;  %479 = vmatmul.mubr.bf16.vlgmr.msra.gmra.mrb[0].mxu1 %v887_v17 }
  0x37   : > { %748 = vmatprep.mubr.msk.bf16.mxu0 %vm385_vm0, %v890_v18  ;;  %752 = vmatprep.mubr.msk.bf16.mxu1 %vm385_vm0, %v892_v19 }
  0x3e   : > { %455 = vmatmul.mubr.bf16.gmra.mrb[4].mxu0 %v894_v20  ;;  %487 = vmatmul.mubr.bf16.gmra.mrb[4].mxu1 %v895_v21 }
  0x3f   : > { %749 = vmatprep.mubr.msk.bf16.mxu0 %vm385_vm0, %v896_v22  ;;  %753 = vmatprep.mubr.msk.bf16.mxu1 %vm385_vm0, %v898_v23 }
  0x46   : > { %463 = vmatmul.mubr.bf16.gmra.mrb[8].mxu0 %v900_v24  ;;  %495 = vmatmul.mubr.bf16.gmra.mrb[8].mxu1 %v901_v25 }
  0x47   : > { %750 = vmatprep.mubr.msk.bf16.mxu0 %vm385_vm0, %v902_v26  ;;  %754 = vmatprep.mubr.msk.bf16.mxu1 %vm385_vm0, %v904_v27 }
  0x4e   : > { %471 = vmatmul.mubr.bf16.gmra.mrb[12].mxu0 %v906_v28  ;;  %503 = vmatmul.mubr.bf16.gmra.mrb[12].mxu1 %v907_v29 }
 0x109   : > { %v448_v31 = vpop.f32.mrb[0].mxu0  ;;  %v480_v33 = vpop.f32.mrb[0].mxu1 }
 0x10a   : > { %v518_v34 = vmul.f32 %v1045_v30, %v448_v31  ;;  %v526_v35 = vmul.f32 %v1045_v30, %v480_v33  ;;  %v450_v36 = vpop.f32.mrb[1].mxu0  ;;  %v482_v37 = vpop.f32.mrb[1].mxu1 }
 0x10b   : > { %v451_v38 = vpop.f32.mrb[2].mxu0  ;;  %v483_v39 = vpop.f32.mrb[2].mxu1 }
 0x10c   : > { %v541_v40 = vadd.f32 %v1050_v32, %v518_v34  ;;  %v549_v41 = vadd.f32 %v1050_v32, %v526_v35  ;;  %v519_v42 = vmul.f32 %v1045_v30, %v451_v38  ;;  %v527_v43 = vmul.f32 %v1045_v30, %v483_v39  ;;  %v453_v44 = vpop.f32.mrb[3].mxu0  ;;  %v485_v45 = vpop.f32.mrb[3].mxu1 }
 0x10e   : > { %v542_v46 = vadd.f32 %v1050_v32, %v519_v42  ;;  %v550_v47 = vadd.f32 %v1050_v32, %v527_v43  ;;  %v557_v48 = vmax.f32 %v541_v40, 0.0  ;;  %v565_v49 = vmax.f32 %v549_v41, 0.0 }
 0x110   : > { %v558_v50 = vmax.f32 %v542_v46, 0.0  ;;  %v566_v51 = vmax.f32 %v550_v47, 0.0 }
 0x111   : > { %v456_v52 = vpop.f32.mrb[4].mxu0  ;;  %v488_v53 = vpop.f32.mrb[4].mxu1 }
 0x112   : > { %v795_v54 = vpack.c.bf16 %v558_v50, %v557_v48  ;;  %v815_v55 = vpack.c.bf16 %v566_v51, %v565_v49  ;;  %v520_v56 = vmul.f32 %v1045_v30, %v456_v52  ;;  %v528_v57 = vmul.f32 %v1045_v30, %v488_v53  ;;  %v458_v58 = vpop.f32.mrb[5].mxu0  ;;  %v490_v59 = vpop.f32.mrb[5].mxu1 }
 0x113   : > { %v459_v60 = vpop.f32.mrb[6].mxu0  ;;  %v491_v61 = vpop.f32.mrb[6].mxu1 }
 0x114   : > { %796 = vst [vmem:[%s1064_s29] sm:$0xff] %v795_v54   ;;  %835 = vst [vmem:[%s1064_s29 + $0x20] sm:$0xff] %v815_v55   ;;  %v543_v62 = vadd.f32 %v1050_v32, %v520_v56  ;;  %v551_v63 = vadd.f32 %v1050_v32, %v528_v57  ;;  %v521_v0 = vmul.f32 %v1045_v30, %v459_v60  ;;  %v461_v2 = vpop.f32.mrb[7].mxu0  ;;  %v493_v3 = vpop.f32.mrb[7].mxu1 }
 0x115   : > { %v529_v1 = vmul.f32 %v1045_v30, %v491_v61 }
 0x116   : > { %v544_v4 = vadd.f32 %v1050_v32, %v521_v0  ;;  %v559_v6 = vmax.f32 %v543_v62, 0.0  ;;  %v567_v7 = vmax.f32 %v551_v63, 0.0 }
 0x117   : > { %v552_v5 = vadd.f32 %v1050_v32, %v529_v1 }
 0x118   : > { %v560_v8 = vmax.f32 %v544_v4, 0.0 }
 0x119   : > { %v568_v9 = vmax.f32 %v552_v5, 0.0  ;;  %v464_v10 = vpop.f32.mrb[8].mxu0  ;;  %v496_v11 = vpop.f32.mrb[8].mxu1 }
 0x11a   : > { %v800_v12 = vpack.c.bf16 %v560_v8, %v559_v6  ;;  %v522_v14 = vmul.f32 %v1045_v30, %v464_v10  ;;  %v530_v15 = vmul.f32 %v1045_v30, %v496_v11  ;;  %v466_v16 = vpop.f32.mrb[9].mxu0  ;;  %v498_v17 = vpop.f32.mrb[9].mxu1 }
 0x11b   : > { %v820_v13 = vpack.c.bf16 %v568_v9, %v567_v7  ;;  %v467_v18 = vpop.f32.mrb[10].mxu0  ;;  %v499_v19 = vpop.f32.mrb[10].mxu1 }
 0x11c   : > { %832 = vst [vmem:[%s1064_s29 + $0x8] sm:$0xff] %v800_v12   ;;  %v545_v20 = vadd.f32 %v1050_v32, %v522_v14  ;;  %v553_v21 = vadd.f32 %v1050_v32, %v530_v15  ;;  %v523_v22 = vmul.f32 %v1045_v30, %v467_v18  ;;  %v531_v23 = vmul.f32 %v1045_v30, %v499_v19  ;;  %v469_v24 = vpop.f32.mrb[11].mxu0  ;;  %v501_v25 = vpop.f32.mrb[11].mxu1 }
 0x11d   : > { %836 = vst [vmem:[%s1064_s29 + $0x28] sm:$0xff] %v820_v13  }
 0x11e   : > { %v546_v26 = vadd.f32 %v1050_v32, %v523_v22  ;;  %v554_v27 = vadd.f32 %v1050_v32, %v531_v23  ;;  %v561_v28 = vmax.f32 %v545_v20, 0.0  ;;  %v569_v29 = vmax.f32 %v553_v21, 0.0 }
 0x120   : > { %v562_v31 = vmax.f32 %v546_v26, 0.0  ;;  %v570_v33 = vmax.f32 %v554_v27, 0.0 }
 0x121   : > { %v472_v34 = vpop.f32.mrb[12].mxu0  ;;  %v504_v35 = vpop.f32.mrb[12].mxu1 }
 0x122   : > { %v805_v36 = vpack.c.bf16 %v562_v31, %v561_v28  ;;  %v825_v37 = vpack.c.bf16 %v570_v33, %v569_v29  ;;  %v524_v38 = vmul.f32 %v1045_v30, %v472_v34  ;;  %v532_v39 = vmul.f32 %v1045_v30, %v504_v35  ;;  %v474_v40 = vpop.f32.mrb[13].mxu0  ;;  %v506_v41 = vpop.f32.mrb[13].mxu1 }
 0x123   : > { %v475_v42 = vpop.f32.mrb[14].mxu0  ;;  %v507_v43 = vpop.f32.mrb[14].mxu1 }
 0x124   : > { %833 = vst [vmem:[%s1064_s29 + $0x10] sm:$0xff] %v805_v36   ;;  %837 = vst [vmem:[%s1064_s29 + $0x30] sm:$0xff] %v825_v37   ;;  %v547_v44 = vadd.f32 %v1050_v32, %v524_v38  ;;  %v555_v45 = vadd.f32 %v1050_v32, %v532_v39  ;;  %v525_v46 = vmul.f32 %v1045_v30, %v475_v42  ;;  %v477_v48 = vpop.f32.mrb[15].mxu0  ;;  %v509_v49 = vpop.f32.mrb[15].mxu1 }
 0x125   : > { %v533_v47 = vmul.f32 %v1045_v30, %v507_v43 }
 0x126   : > { %v548_v50 = vadd.f32 %v1050_v32, %v525_v46  ;;  %v563_v52 = vmax.f32 %v547_v44, 0.0  ;;  %v571_v53 = vmax.f32 %v555_v45, 0.0 }
 0x127   : > { %v556_v51 = vadd.f32 %v1050_v32, %v533_v47 }
 0x128   : > { %v564_v54 = vmax.f32 %v548_v50, 0.0 }
 0x129   : > { %v572_v55 = vmax.f32 %v556_v51, 0.0 }
 0x12a   : > { %v810_v56 = vpack.c.bf16 %v564_v54, %v563_v52 }
 0x12b   : > { %v830_v57 = vpack.c.bf16 %v572_v55, %v571_v53 }
 0x12c   : > { %834 = vst [vmem:[%s1064_s29 + $0x18] sm:$0xff] %v810_v56  }
 0x12d   : > { %838 = vst [vmem:[%s1064_s29 + $0x38] sm:$0xff] %v830_v57  }
 0x12e PF: > { %s14_s15 = sadd.s32 1, %s914_s15  }
 0x12f   : > { %p11_p4 = scmp.ge.s32.totalorder %s14_s15, 4  }
 0x131   :  { %13 = sbr.rel (!%p11_p4) target bundleno = 1 (0x1), region = 66 }

// kernel: _lambda_.8
= control target key start
LH: loop header
LB: loop body
LE: loop exit
PB: predicated region body
PF: predicated region fallthrough
CT: control target
= control target key end

     0   :  { %s1312_s15 = smov 0   ;;  %s1497_s0 = inlined_call_operand.vmem [shape: bf16[256,360], index: 0, kind: input, shape index: {}]   ;;  %s1498_s1 = inlined_call_operand.vmem [shape: bf16[360,128], index: 1, kind: input, shape index: {}]   ;;  %s1499_s2 = inlined_call_operand.vmem [shape: f32[1,128], index: 2, kind: input, shape index: {}]   ;;  %s1500_s3 = inlined_call_operand.vmem [shape: f32[1,128], index: 3, kind: input, shape index: {}]   ;;  %s1501_s4 = inlined_call_operand.vmem [shape: bf16[256,128], index: 4, kind: output, shape index: {}]  }
   0x1 LB: > { %s958_s16 = sadd.s32 4294967295, %s1285_s15   ;;  %p962_p0 = scmp.ge.s32.totalorder %s1285_s15, 1  ;;  %s1285_s15 = sphi %s1312_s15, %s14_s15  }
   0x2   : > { %p164_p1 = scmp.lt.s32.totalorder %s1285_s15, 3 }
   0x4   : > { %p165_p2 = pnand %p962_p0, %p164_p1 }
   0x5   : > { %v1224_v0 = vld [vmem:[%s1498_s1 + $0x40] sm:$0xff] (!%p165_p2)   ;;  %v1226_v2 = vld [vmem:[%s1498_s1 + $0x48] sm:$0xff] (!%p165_p2)   ;;  %v1229_v5 = vld [vmem:[%s1498_s1 + $0x50] sm:$0xff] (!%p165_p2)   ;;  %s963_s29 = sshll.u32 (!%p165_p2), %s958_s16, 4  ;;  %vm562_vm0 = vcmask (!%p165_p2), 1043456   ;;  %vm537_vm1 = vcmask (!%p165_p2), 850944  }
   0x6   : > { %168 = sbr.rel (%p165_p2) target bundleno = 322 (0x142), region = 36  ;;  %v1225_v1 = vld [vmem:[%s1498_s1] sm:$0xff] (!%p165_p2)   ;;  %1105 = vmatprep.subr.bf16.mxu0 (!%p165_p2), %v1224_v0  ;;  %v1227_v3 = vld [vmem:[%s1498_s1 + $0x8] sm:$0xff] (!%p165_p2)   ;;  %v1230_v6 = vld [vmem:[%s1498_s1 + $0x10] sm:$0xff] (!%p165_p2)   ;;  %p192_p3 = scmp.lt.s32.totalorder (!%p165_p2), %s963_s29, 31 }
   0x7   : > { %1106 = vmatpush3.bf16.msra.mxu0 (!%p165_p2), %v1225_v1  ;;  %v1228_v4 = vld [vmem:[%s1498_s1 + $0x80] sm:$0xff] (!%p165_p2)   ;;  %v1231_v7 = vld [vmem:[%s1498_s1 + $0x88] sm:$0xff] (!%p165_p2)   ;;  %v1232_v8 = vld [vmem:[%s1498_s1 + $0x58] sm:$0xff] (!%p165_p2)  }
   0x8   : > { %1107 = vmatprep.subr.bf16.mxu0 (!%p165_p2), %v1226_v2  ;;  %1184 = vmatprep.subr.bf16.mxu1 (!%p165_p2), %v1228_v4  ;;  %v1234_v9 = vld [vmem:[%s1498_s1 + $0x90] sm:$0xff] (!%p165_p2)   ;;  %v1233_v10 = vld [vmem:[%s1498_s1 + $0x18] sm:$0xff] (!%p165_p2)   ;;  %v1235_v11 = vld [vmem:[%s1498_s1 + $0x60] sm:$0xff] (!%p165_p2)  }
   0x9   : > { %1185 = vmatpush3.bf16.msra.mxu1 (!%p165_p2), %v1228_v4  ;;  %v1237_v12 = vld [vmem:[%s1498_s1 + $0x98] sm:$0xff] (!%p165_p2)   ;;  %v1236_v13 = vld [vmem:[%s1498_s1 + $0x20] sm:$0xff] (!%p165_p2)   ;;  %v1238_v14 = vld [vmem:[%s1498_s1 + $0x68] sm:$0xff] (!%p165_p2)  }
   0xa   : > { %1186 = vmatprep.subr.bf16.mxu1 (!%p165_p2), %v1231_v7  ;;  %v1240_v15 = vld [vmem:[%s1498_s1 + $0xa0] sm:$0xff] (!%p165_p2)   ;;  %v1239_v16 = vld [vmem:[%s1498_s1 + $0x28] sm:$0xff] (!%p165_p2)   ;;  %v1241_v17 = vld [vmem:[%s1498_s1 + $0x70] sm:$0xff] (!%p165_p2)  }
   0xb   : > { %1108 = vmatpush3.bf16.msra.mxu0 (!%p165_p2), %v1227_v3  ;;  %v1243_v18 = vld [vmem:[%s1498_s1 + $0xa8] sm:$0xff] (!%p165_p2)   ;;  %v1242_v19 = vld [vmem:[%s1498_s1 + $0x30] sm:$0xff] (!%p165_p2)   ;;  %v1244_v20 = vld [vmem:[%s1498_s1 + $0x78] sm:$0xff] (!%p165_p2)  }
   0xc   : > { %1109 = vmatprep.subr.bf16.mxu0 (!%p165_p2), %v1229_v5  ;;  %v1246_v21 = vld [vmem:[%s1498_s1 + $0xb0] ss:$0 sps:$4 sm:$0xff] (!%p165_p2)   ;;  %v1245_v24 = vld [vmem:[%s1498_s1 + $0x38] sm:$0xff] (!%p165_p2)   ;;  %v1432_v56 = vld [vmem:[%s1499_s2] ss:$0 sm:$0xff] (!%p165_p2) }
   0xd   : > { %1187 = vmatpush3.bf16.msra.mxu1 %v1231_v7  ;;  %s1503_s29 = smov (!%p192_p3, %s963_s29), 31  ;;  %v564_v25 = vsel %vm562_vm0, %v1246_v21, 0  ;;  %v1437_v60 = vld [vmem:[%s1500_s3] ss:$0 sm:$0xff] }
   0xe   : > { %1188 = vmatprep.subr.bf16.mxu1 %v1234_v9  ;;  %s1215_s25 = smul.u32 12, %s1503_s29  ;;  %s966_s23 = sshll.u32 %s1503_s29, 2 }
   0xf   : > { %1110 = vmatpush3.bf16.msra.mxu0 %v1230_v6  ;;  %s1447_s26 = scalar_lea.vmem %s1501_s4, %s966_s23 }
  0x10   : > { %1111 = vmatprep.subr.bf16.mxu0 %v1232_v8  ;;  %s1383_s9 = scalar_lea.vmem %s1497_s0, %s1215_s25 }
  0x11   : > { %1189 = vmatpush3.bf16.msra.mxu1 %v1234_v9  ;;  %v1249_v22 = vld [vmem:[%s1383_s9 + $0x4] ss:$12 sps:$4 sm:$0xff]   ;;  %v1250_v23 = vld [vmem:[%s1383_s9 + $0x8] ss:$12 sps:$4 sm:$0xff]   ;;  %v1247_v26 = vld [vmem:[%s1383_s9] ss:$12 sps:$4 sm:$0xff]  }
  0x12   : > { %1190 = vmatprep.subr.bf16.mxu1 %v1237_v12  ;;  %598 = vmatprep.mubr.bf16.mxu0 %v1249_v22  ;;  %v1251_v27 = vld [vmem:[%s1383_s9 + $0x20] ss:$12 sps:$4 sm:$0xff]   ;;  %v1252_v28 = vld [vmem:[%s1383_s9 + $0x1c] ss:$12 sps:$4 sm:$0xff]   ;;  %v1258_v29 = vld [vmem:[%s1383_s9 + $0x38] ss:$12 sps:$4 sm:$0xff]  }
  0x13   : > { %1112 = vmatpush3.bf16.msra.mxu0 %v1233_v10  ;;  %1198 = vmatprep.mubr.msk.bf16.mxu1 %vm537_vm1, %v1250_v23  ;;  %v1254_v30 = vld [vmem:[%s1383_s9 + $0x18] ss:$12 sps:$4 sm:$0xff]   ;;  %v1255_v31 = vld [vmem:[%s1383_s9 + $0x34] ss:$12 sps:$4 sm:$0xff]   ;;  %v1259_v32 = vld [vmem:[%s1383_s9 + $0x50] ss:$12 sps:$4 sm:$0xff]  }
  0x14   : > { %1113 = vmatprep.subr.bf16.mxu0 %v1235_v11  ;;  %v1266_v33 = vld [vmem:[%s1383_s9 + $0x68] ss:$12 sps:$4 sm:$0xff]   ;;  %v1257_v34 = vld [vmem:[%s1383_s9 + $0x30] ss:$12 sps:$4 sm:$0xff]   ;;  %v1267_v35 = vld [vmem:[%s1383_s9 + $0x80] ss:$12 sps:$4 sm:$0xff]  }
  0x15   : > { %1191 = vmatpush3.bf16.msra.mxu1 %v1237_v12  ;;  %v1260_v36 = vld [vmem:[%s1383_s9 + $0x4c] ss:$12 sps:$4 sm:$0xff]   ;;  %v1262_v38 = vld [vmem:[%s1383_s9 + $0x48] ss:$12 sps:$4 sm:$0xff]   ;;  %v1275_v39 = vld [vmem:[%s1383_s9 + $0xb0] ss:$12 sps:$4 sm:$0xff]  }
  0x16   : > { %1192 = vmatprep.subr.bf16.mxu1 %v1240_v15  ;;  %v1274_v37 = vld [vmem:[%s1383_s9 + $0x98] ss:$12 sps:$4 sm:$0xff]   ;;  %v1265_v41 = vld [vmem:[%s1383_s9 + $0x60] ss:$12 sps:$4 sm:$0xff]   ;;  %v1268_v42 = vld [vmem:[%s1383_s9 + $0x7c] ss:$12 sps:$4 sm:$0xff]  }
  0x17   : > { %1114 = vmatpush3.bf16.msra.mxu0 %v1236_v13  ;;  %v1263_v40 = vld [vmem:[%s1383_s9 + $0x64] ss:$12 sps:$4 sm:$0xff]   ;;  %v1271_v44 = vld [vmem:[%s1383_s9 + $0x94] ss:$12 sps:$4 sm:$0xff]   ;;  %v1276_v46 = vld [vmem:[%s1383_s9 + $0xac] ss:$12 sps:$4 sm:$0xff]  }
  0x18   : > { %1115 = vmatprep.subr.bf16.mxu0 %v1238_v14  ;;  %v1270_v43 = vld [vmem:[%s1383_s9 + $0x78] ss:$12 sps:$4 sm:$0xff]   ;;  %v1273_v45 = vld [vmem:[%s1383_s9 + $0x90] ss:$12 sps:$4 sm:$0xff]   ;;  %v1278_v47 = vld [vmem:[%s1383_s9 + $0xa8] ss:$12 sps:$4 sm:$0xff]  }
  0x19   : > { %1193 = vmatpush3.bf16.msra.mxu1 %v1240_v15 }
  0x1a   : > { %1194 = vmatprep.subr.bf16.mxu1 %v1243_v18 }
  0x1b   : > { %1116 = vmatpush3.bf16.msra.mxu0 %v1239_v16 }
  0x1c   : > { %1117 = vmatprep.subr.bf16.mxu0 %v1241_v17 }
  0x1d   : > { %1195 = vmatpush3.bf16.msra.mxu1 %v1243_v18 }
  0x1e   : > { %1214 = vmatprep.subr.msk.bf16.mxu1 %vm562_vm0, %v1246_v21 }
  0x1f   : > { %1118 = vmatpush3.bf16.msra.mxu0 %v1242_v19 }
  0x20   : > { %1119 = vmatprep.subr.bf16.mxu0 %v1244_v20 }
  0x21   : > { %1197 = vmatpush3.bf16.msra.mxu1 %v564_v25 }
  0x23   : > { %1120 = vmatpush3.bf16.msra.mxu0 %v1245_v24 }
  0x24   : > { %1199 = vmatmul.mubr.msk.bf16.vlgmr.msra.gmra.mrb[0].mxu1 %vm537_vm1, %v1251_v27 }
  0x25   : > { %1202 = vmatprep.mubr.msk.bf16.mxu1 %vm537_vm1, %v1258_v29 }
  0x26   : > { %599 = vmatmul.mubr.bf16.vlgmr.msra.gmra.mrb[0].mxu0 %v1247_v26 }
  0x27   : > { %606 = vmatprep.mubr.bf16.mxu0 %v1252_v28 }
  0x2c   : > { %1203 = vmatmul.mubr.msk.bf16.gmra.mrb[4].mxu1 %vm537_vm1, %v1259_v32 }
  0x2d   : > { %1206 = vmatprep.mubr.msk.bf16.mxu1 %vm537_vm1, %v1266_v33 }
  0x2e   : > { %607 = vmatmul.mubr.bf16.gmra.mrb[4].mxu0 %v1254_v30 }
  0x2f   : > { %614 = vmatprep.mubr.bf16.mxu0 %v1255_v31 }
  0x34   : > { %1207 = vmatmul.mubr.msk.bf16.gmra.mrb[8].mxu1 %vm537_vm1, %v1267_v35 }
  0x35   : > { %1210 = vmatprep.mubr.msk.bf16.mxu1 %vm537_vm1, %v1274_v37 }
  0x36   : > { %615 = vmatmul.mubr.bf16.gmra.mrb[8].mxu0 %v1257_v34 }
  0x37   : > { %622 = vmatprep.mubr.bf16.mxu0 %v1260_v36 }
  0x3c   : > { %1211 = vmatmul.mubr.msk.bf16.gmra.mrb[12].mxu1 %vm537_vm1, %v1275_v39 }
  0x3e   : > { %623 = vmatmul.mubr.bf16.gmra.mrb[12].mxu0 %v1262_v38 }
  0x3f   : > { %630 = vmatprep.mubr.bf16.mxu0 %v1263_v40 }
  0x46   : > { %631 = vmatmul.mubr.bf16.gmra.mrb[16].mxu0 %v1265_v41 }
  0x47   : > { %638 = vmatprep.mubr.bf16.mxu0 %v1268_v42 }
  0x4e   : > { %639 = vmatmul.mubr.bf16.gmra.mrb[20].mxu0 %v1270_v43 }
  0x4f   : > { %646 = vmatprep.mubr.bf16.mxu0 %v1271_v44 }
  0x56   : > { %647 = vmatmul.mubr.bf16.gmra.mrb[24].mxu0 %v1273_v45 }
  0x57   : > { %654 = vmatprep.mubr.bf16.mxu0 %v1276_v46 }
  0x5e   : > { %655 = vmatmul.mubr.bf16.gmra.mrb[28].mxu0 %v1278_v47 }
  0xf7   : > { %v1200_v49 = vpop.f32.mrb[0].mxu1 }
  0xf8   : > { %v697_v51 = vpop.f32.mrb[1].mxu1 }
  0xf9   : > { %v1121_v48 = vpop.f32.mrb[0].mxu0  ;;  %v1201_v54 = vpop.f32.mrb[2].mxu1 }
  0xfa   : > { %v1122_v50 = vpop.f32.mrb[1].mxu0  ;;  %v700_v57 = vpop.f32.mrb[3].mxu1 }
  0xfb   : > { %v1123_v52 = vadd.f32 %v1122_v50, %v1121_v48  ;;  %v1124_v53 = vpop.f32.mrb[2].mxu0 }
  0xfc   : > { %v1125_v55 = vpop.f32.mrb[3].mxu0 }
  0xfd   : > { %v1126_v58 = vadd.f32 %v1125_v55, %v1124_v53  ;;  %v698_v59 = vadd.f32 %v1123_v52, %v697_v51 }
  0xff   : > { %v767_v61 = vmul.f32 %v1432_v56, %v698_v59  ;;  %v701_v62 = vadd.f32 %v1126_v58, %v700_v57  ;;  %v1204_v2 = vpop.f32.mrb[4].mxu1 }
 0x100   : > { %v713_v4 = vpop.f32.mrb[5].mxu1 }
 0x101   : > { %v790_v63 = vadd.f32 %v1437_v60, %v767_v61  ;;  %v768_v0 = vmul.f32 %v1432_v56, %v701_v62  ;;  %v1127_v1 = vpop.f32.mrb[4].mxu0  ;;  %v1205_v8 = vpop.f32.mrb[6].mxu1 }
 0x102   : > { %v1128_v3 = vpop.f32.mrb[5].mxu0  ;;  %v716_v10 = vpop.f32.mrb[7].mxu1 }
 0x103   : > { %v791_v5 = vadd.f32 %v1437_v60, %v768_v0  ;;  %v1129_v6 = vadd.f32 %v1128_v3, %v1127_v1  ;;  %v1130_v7 = vpop.f32.mrb[6].mxu0  ;;  %v806_v11 = vmax.f32 %v790_v63, 0.0 }
 0x104   : > { %v1131_v9 = vpop.f32.mrb[7].mxu0 }
 0x105   : > { %v807_v12 = vmax.f32 %v791_v5, 0.0  ;;  %v706_v13 = vadd.f32 %v1200_v49, %v1129_v6  ;;  %v1132_v14 = vadd.f32 %v1131_v9, %v1130_v7 }
 0x107   : > { %v1061_v15 = vpack.c.bf16 %v807_v12, %v806_v11  ;;  %v769_v16 = vmul.f32 %v1432_v56, %v706_v13  ;;  %v709_v17 = vadd.f32 %v1201_v54, %v1132_v14  ;;  %v1453_v21 = vpop.f32.mrb[8].mxu1 }
 0x108   : > { %v729_v23 = vpop.f32.mrb[9].mxu1 }
 0x109   : > { %1062 = vst [vmem:[%s1447_s26] sm:$0xff] %v1061_v15   ;;  %v792_v18 = vadd.f32 %v1437_v60, %v769_v16  ;;  %v770_v19 = vmul.f32 %v1432_v56, %v709_v17  ;;  %v1133_v20 = vpop.f32.mrb[8].mxu0  ;;  %v1209_v27 = vpop.f32.mrb[10].mxu1 }
 0x10a   : > { %v1134_v22 = vpop.f32.mrb[9].mxu0  ;;  %v732_v29 = vpop.f32.mrb[11].mxu1 }
 0x10b   : > { %v793_v24 = vadd.f32 %v1437_v60, %v770_v19  ;;  %v1135_v25 = vadd.f32 %v1134_v22, %v1133_v20  ;;  %v1136_v26 = vpop.f32.mrb[10].mxu0  ;;  %v808_v30 = vmax.f32 %v792_v18, 0.0 }
 0x10c   : > { %v1137_v28 = vpop.f32.mrb[11].mxu0 }
 0x10d   : > { %v809_v31 = vmax.f32 %v793_v24, 0.0  ;;  %v1138_v32 = vadd.f32 %v1137_v28, %v1136_v26  ;;  %v714_v33 = vadd.f32 %v1135_v25, %v713_v4 }
 0x10f   : > { %v1066_v34 = vpack.c.bf16 %v809_v31, %v808_v30  ;;  %v771_v35 = vmul.f32 %v1432_v56, %v714_v33  ;;  %v717_v36 = vadd.f32 %v1138_v32, %v716_v10  ;;  %v1460_v40 = vpop.f32.mrb[12].mxu1 }
 0x110   : > { %v745_v42 = vpop.f32.mrb[13].mxu1 }
 0x111   : > { %1098 = vst [vmem:[%s1447_s26 + $0x8] sm:$0xff] %v1066_v34   ;;  %v794_v37 = vadd.f32 %v1437_v60, %v771_v35  ;;  %v772_v38 = vmul.f32 %v1432_v56, %v717_v36  ;;  %v1139_v39 = vpop.f32.mrb[12].mxu0  ;;  %v1463_v46 = vpop.f32.mrb[14].mxu1 }
 0x112   : > { %v1140_v41 = vpop.f32.mrb[13].mxu0  ;;  %v748_v48 = vpop.f32.mrb[15].mxu1 }
 0x113   : > { %v795_v43 = vadd.f32 %v1437_v60, %v772_v38  ;;  %v1141_v44 = vadd.f32 %v1140_v41, %v1139_v39  ;;  %v1142_v45 = vpop.f32.mrb[14].mxu0  ;;  %v810_v49 = vmax.f32 %v794_v37, 0.0 }
 0x114   : > { %v1143_v47 = vpop.f32.mrb[15].mxu0 }
 0x115   : > { %v811_v50 = vmax.f32 %v795_v43, 0.0  ;;  %v722_v51 = vadd.f32 %v1204_v2, %v1141_v44  ;;  %v1144_v52 = vadd.f32 %v1143_v47, %v1142_v45 }
 0x117   : > { %v1071_v53 = vpack.c.bf16 %v811_v50, %v810_v49  ;;  %v773_v54 = vmul.f32 %v1432_v56, %v722_v51  ;;  %v725_v55 = vadd.f32 %v1205_v8, %v1144_v52 }
 0x119   : > { %1099 = vst [vmem:[%s1447_s26 + $0x10] sm:$0xff] %v1071_v53   ;;  %v796_v57 = vadd.f32 %v1437_v60, %v773_v54  ;;  %v774_v58 = vmul.f32 %v1432_v56, %v725_v55  ;;  %v1145_v59 = vpop.f32.mrb[16].mxu0 }
 0x11a   : > { %v1146_v61 = vpop.f32.mrb[17].mxu0 }
 0x11b   : > { %v797_v62 = vadd.f32 %v1437_v60, %v774_v58  ;;  %v1147_v63 = vadd.f32 %v1146_v61, %v1145_v59  ;;  %v1148_v0 = vpop.f32.mrb[18].mxu0  ;;  %v812_v3 = vmax.f32 %v796_v57, 0.0 }
 0x11c   : > { %v1149_v1 = vpop.f32.mrb[19].mxu0 }
 0x11d   : > { %v813_v2 = vmax.f32 %v797_v62, 0.0  ;;  %v1150_v4 = vadd.f32 %v1149_v1, %v1148_v0  ;;  %v730_v5 = vadd.f32 %v1147_v63, %v729_v23 }
 0x11f   : > { %v1076_v6 = vpack.c.bf16 %v813_v2, %v812_v3  ;;  %v775_v7 = vmul.f32 %v1432_v56, %v730_v5  ;;  %v733_v8 = vadd.f32 %v1150_v4, %v732_v29 }
 0x121   : > { %1100 = vst [vmem:[%s1447_s26 + $0x18] sm:$0xff] %v1076_v6   ;;  %v798_v9 = vadd.f32 %v1437_v60, %v775_v7  ;;  %v776_v10 = vmul.f32 %v1432_v56, %v733_v8  ;;  %v1151_v11 = vpop.f32.mrb[20].mxu0 }
 0x122   : > { %v1152_v12 = vpop.f32.mrb[21].mxu0 }
 0x123   : > { %v799_v13 = vadd.f32 %v1437_v60, %v776_v10  ;;  %v1153_v14 = vadd.f32 %v1152_v12, %v1151_v11  ;;  %v1154_v15 = vpop.f32.mrb[22].mxu0  ;;  %v814_v17 = vmax.f32 %v798_v9, 0.0 }
 0x124   : > { %v1155_v16 = vpop.f32.mrb[23].mxu0 }
 0x125   : > { %v815_v18 = vmax.f32 %v799_v13, 0.0  ;;  %v738_v19 = vadd.f32 %v1453_v21, %v1153_v14  ;;  %v1156_v20 = vadd.f32 %v1155_v16, %v1154_v15 }
 0x127   : > { %v1081_v22 = vpack.c.bf16 %v815_v18, %v814_v17  ;;  %v777_v23 = vmul.f32 %v1432_v56, %v738_v19  ;;  %v741_v24 = vadd.f32 %v1209_v27, %v1156_v20 }
 0x129   : > { %1101 = vst [vmem:[%s1447_s26 + $0x20] sm:$0xff] %v1081_v22   ;;  %v800_v25 = vadd.f32 %v1437_v60, %v777_v23  ;;  %v778_v26 = vmul.f32 %v1432_v56, %v741_v24  ;;  %v1157_v28 = vpop.f32.mrb[24].mxu0 }
 0x12a   : > { %v1158_v29 = vpop.f32.mrb[25].mxu0 }
 0x12b   : > { %v801_v30 = vadd.f32 %v1437_v60, %v778_v26  ;;  %v1159_v31 = vadd.f32 %v1158_v29, %v1157_v28  ;;  %v1160_v32 = vpop.f32.mrb[26].mxu0  ;;  %v816_v34 = vmax.f32 %v800_v25, 0.0 }
 0x12c   : > { %v1161_v33 = vpop.f32.mrb[27].mxu0 }
 0x12d   : > { %v817_v21 = vmax.f32 %v801_v30, 0.0  ;;  %v1162_v35 = vadd.f32 %v1161_v33, %v1160_v32  ;;  %v746_v36 = vadd.f32 %v1159_v31, %v745_v42 }
 0x12f   : > { %v1086_v37 = vpack.c.bf16 %v817_v21, %v816_v34  ;;  %v779_v27 = vmul.f32 %v1432_v56, %v746_v36  ;;  %v749_v38 = vadd.f32 %v1162_v35, %v748_v48 }
 0x131   : > { %1102 = vst [vmem:[%s1447_s26 + $0x28] sm:$0xff] %v1086_v37   ;;  %v802_v39 = vadd.f32 %v1437_v60, %v779_v27  ;;  %v780_v41 = vmul.f32 %v1432_v56, %v749_v38  ;;  %v1163_v43 = vpop.f32.mrb[28].mxu0 }
 0x132   : > { %v1164_v44 = vpop.f32.mrb[29].mxu0 }
 0x133   : > { %v803_v45 = vadd.f32 %v1437_v60, %v780_v41  ;;  %v1165_v47 = vadd.f32 %v1164_v44, %v1163_v43  ;;  %v1166_v49 = vpop.f32.mrb[30].mxu0  ;;  %v818_v51 = vmax.f32 %v802_v39, 0.0 }
 0x134   : > { %v1167_v50 = vpop.f32.mrb[31].mxu0 }
 0x135   : > { %v819_v42 = vmax.f32 %v803_v45, 0.0  ;;  %v754_v52 = vadd.f32 %v1460_v40, %v1165_v47  ;;  %v1168_v53 = vadd.f32 %v1167_v50, %v1166_v49 }
 0x137   : > { %v1091_v48 = vpack.c.bf16 %v819_v42, %v818_v51  ;;  %v781_v54 = vmul.f32 %v1432_v56, %v754_v52  ;;  %v757_v55 = vadd.f32 %v1463_v46, %v1168_v53 }
 0x139   : > { %1103 = vst [vmem:[%s1447_s26 + $0x30] sm:$0xff] %v1091_v48   ;;  %v804_v57 = vadd.f32 %v1437_v60, %v781_v54  ;;  %v782_v58 = vmul.f32 %v1432_v56, %v757_v55 }
 0x13b   : > { %v805_v59 = vadd.f32 %v1437_v60, %v782_v58  ;;  %v820_v61 = vmax.f32 %v804_v57, 0.0 }
 0x13d   : > { %v821_v62 = vmax.f32 %v805_v59, 0.0 }
 0x13f   : > { %v1096_v63 = vpack.c.bf16 %v821_v62, %v820_v61 }
 0x141   : > { %1104 = vst [vmem:[%s1447_s26 + $0x38] sm:$0xff] %v1096_v63  }
 0x142 PF: > { %s14_s15 = sadd.s32 1, %s1285_s15  }
 0x143   : > { %p11_p4 = scmp.ge.s32.totalorder %s14_s15, 4  }
 0x145   :  { %13 = sbr.rel (!%p11_p4) target bundleno = 1 (0x1), region = 66 }

// kernel: _lambda_.9
= control target key start
LH: loop header
LB: loop body
LE: loop exit
PB: predicated region body
PF: predicated region fallthrough
CT: control target
= control target key end

     0   :  { %s949_s15 = smov 0   ;;  %s1105_s0 = inlined_call_operand.vmem [shape: bf16[16,640], index: 0, kind: input, shape index: {}]   ;;  %s1106_s1 = inlined_call_operand.vmem [shape: bf16[640,128], index: 1, kind: input, shape index: {}]   ;;  %s1107_s2 = inlined_call_operand.vmem [shape: f32[1,128], index: 2, kind: input, shape index: {}]   ;;  %s1108_s3 = inlined_call_operand.vmem [shape: f32[1,128], index: 3, kind: input, shape index: {}]   ;;  %s1109_s4 = inlined_call_operand.vmem [shape: f32[16,128], index: 4, kind: output, shape index: {}]  }
   0x1 LB: > { %s729_s16 = sadd.s32 4294967295, %s920_s15   ;;  %p733_p0 = scmp.ge.s32.totalorder %s920_s15, 1  ;;  %s920_s15 = sphi %s949_s15, %s14_s15  }
   0x2   : > { %p162_p1 = scmp.lt.s32.totalorder %s920_s15, 3 }
   0x4   : > { %p163_p2 = pnand %p733_p0, %p162_p1 }
   0x5   : > { %v869_v0 = vld [vmem:[%s1106_s1 + $0x40] sm:$0xff] (!%p163_p2)   ;;  %v873_v4 = vld [vmem:[%s1106_s1 + $0x48] sm:$0xff] (!%p163_p2)   ;;  %v877_v8 = vld [vmem:[%s1106_s1 + $0x50] sm:$0xff] (!%p163_p2)   ;;  %p187_p3 = scmp.lt.s32.totalorder (!%p163_p2), %s729_s16, 1  ;;  %v922_v36 = vmov (!%p163_p2), 0.0   ;;  %vm923_vm0 = vmmov (!%p163_p2), 0  }
   0x6   : > { %166 = sbr.rel (%p163_p2) target bundleno = 292 (0x124), region = 36  ;;  %v870_v1 = vld [vmem:[%s1106_s1 + $0xc0] sm:$0xff] (!%p163_p2)   ;;  %785 = vmatprep.subr.bf16.mxu0 (!%p163_p2), %v869_v0  ;;  %v874_v5 = vld [vmem:[%s1106_s1 + $0xc8] sm:$0xff] (!%p163_p2)   ;;  %v878_v9 = vld [vmem:[%s1106_s1 + $0xd0] sm:$0xff] (!%p163_p2)  }
   0x7   : > { %v871_v2 = vld [vmem:[%s1106_s1] sm:$0xff] (!%p163_p2)   ;;  %807 = vmatprep.subr.bf16.mxu1 (!%p163_p2), %v870_v1  ;;  %v875_v6 = vld [vmem:[%s1106_s1 + $0x8] sm:$0xff] (!%p163_p2)   ;;  %v879_v10 = vld [vmem:[%s1106_s1 + $0x10] sm:$0xff] (!%p163_p2)  }
   0x8   : > { %v872_v3 = vld [vmem:[%s1106_s1 + $0x80] sm:$0xff] (!%p163_p2)   ;;  %786 = vmatpush3.bf16.msra.mxu0 (!%p163_p2), %v871_v2  ;;  %v876_v7 = vld [vmem:[%s1106_s1 + $0x88] sm:$0xff] (!%p163_p2)   ;;  %v880_v11 = vld [vmem:[%s1106_s1 + $0x90] sm:$0xff] (!%p163_p2)  }
   0x9   : > { %808 = vmatpush3.bf16.msra.mxu1 (!%p163_p2), %v872_v3  ;;  %787 = vmatprep.subr.bf16.mxu0 (!%p163_p2), %v873_v4  ;;  %v881_v12 = vld [vmem:[%s1106_s1 + $0x58] sm:$0xff] (!%p163_p2)   ;;  %v885_v16 = vld [vmem:[%s1106_s1 + $0x60] sm:$0xff] (!%p163_p2)   ;;  %v889_v20 = vld [vmem:[%s1106_s1 + $0x68] sm:$0xff] (!%p163_p2)  }
   0xa   : > { %809 = vmatprep.subr.bf16.mxu1 (!%p163_p2), %v874_v5  ;;  %v882_v13 = vld [vmem:[%s1106_s1 + $0xd8] sm:$0xff] (!%p163_p2)   ;;  %v886_v17 = vld [vmem:[%s1106_s1 + $0xe0] sm:$0xff] (!%p163_p2)   ;;  %v890_v21 = vld [vmem:[%s1106_s1 + $0xe8] sm:$0xff] (!%p163_p2)  }
   0xb   : > { %v883_v14 = vld [vmem:[%s1106_s1 + $0x18] sm:$0xff] (!%p163_p2)   ;;  %v887_v18 = vld [vmem:[%s1106_s1 + $0x20] sm:$0xff] (!%p163_p2)   ;;  %v891_v22 = vld [vmem:[%s1106_s1 + $0x28] sm:$0xff] (!%p163_p2)  }
   0xc   : > { %788 = vmatpush3.bf16.msra.mxu0 (!%p163_p2), %v875_v6  ;;  %v884_v15 = vld [vmem:[%s1106_s1 + $0x98] sm:$0xff] (!%p163_p2)   ;;  %v888_v19 = vld [vmem:[%s1106_s1 + $0xa0] sm:$0xff] (!%p163_p2)   ;;  %v892_v23 = vld [vmem:[%s1106_s1 + $0xa8] sm:$0xff] (!%p163_p2)  }
   0xd   : > { %810 = vmatpush3.bf16.msra.mxu1 %v876_v7  ;;  %789 = vmatprep.subr.bf16.mxu0 %v877_v8  ;;  %s1111_s16 = smov (!%p187_p3, %s729_s16), 1  ;;  %v893_v24 = vld [vmem:[%s1106_s1 + $0x70] sm:$0xff]   ;;  %v897_v28 = vld [vmem:[%s1106_s1 + $0x78] sm:$0xff]   ;;  %v906_v39 = vld [vmem:[%s1106_s1 + $0x100] sm:$0xff]  }
   0xe   : > { %811 = vmatprep.subr.bf16.mxu1 %v878_v9  ;;  %v894_v25 = vld [vmem:[%s1106_s1 + $0xf0] sm:$0xff]   ;;  %s858_s21 = smul.u32 20, %s1111_s16  ;;  %v898_v29 = vld [vmem:[%s1106_s1 + $0xf8] sm:$0xff]   ;;  %v907_v40 = vld [vmem:[%s1106_s1 + $0x108] sm:$0xff]   ;;  %s735_s7 = sshll.u32 %s1111_s16, 3 }
   0xf   : > { %v895_v26 = vld [vmem:[%s1106_s1 + $0x30] sm:$0xff]   ;;  %v899_v30 = vld [vmem:[%s1106_s1 + $0x38] sm:$0xff]   ;;  %v910_v43 = vld [vmem:[%s1106_s1 + $0x120] sm:$0xff]   ;;  %s195_s10 = scalar_lea.vmem %s1109_s4, %s735_s7 }
  0x10   : > { %790 = vmatpush3.bf16.msra.mxu0 %v879_v10  ;;  %v896_v27 = vld [vmem:[%s1106_s1 + $0xb0] sm:$0xff]   ;;  %s1057_s6 = scalar_lea.vmem %s1105_s0, %s858_s21  ;;  %v900_v31 = vld [vmem:[%s1106_s1 + $0xb8] sm:$0xff]   ;;  %v911_v44 = vld [vmem:[%s1106_s1 + $0x128] sm:$0xff]  }
  0x11   : > { %812 = vmatpush3.bf16.msra.mxu1 %v880_v11  ;;  %791 = vmatprep.subr.bf16.mxu0 %v881_v12  ;;  %v197_v32 = vld [vmem:[%s1057_s6] sm:$0xff]  ;;  %v198_v35 = vld [vmem:[%s1057_s6 + $0x8] sm:$0xff]  ;;  %v908_v41 = vld [vmem:[%s1106_s1 + $0x110] sm:$0xff]  }
  0x12   : > { %813 = vmatprep.subr.bf16.mxu1 %v882_v13  ;;  %v736_v33 = vcombine.low %v197_v32, %v197_v32  ;;  %v737_v34 = vcombine.high %v197_v32, %v197_v32  ;;  %v738_v37 = vcombine.low %v198_v35, %v198_v35  ;;  %v739_v38 = vcombine.high %v198_v35, %v198_v35  ;;  %v909_v42 = vld [vmem:[%s1106_s1 + $0x118] sm:$0xff]   ;;  %v912_v45 = vld [vmem:[%s1106_s1 + $0x130] sm:$0xff]   ;;  %v781_v60 = vld [vmem:[%s1107_s2] ss:$0 sm:$0xff] }
  0x13   : > { %v913_v46 = vld [vmem:[%s1106_s1 + $0x138] sm:$0xff]   ;;  %v903_v47 = vld [vmem:[%s1057_s6 + $0x10] ss:$0 sps:$4 sm:$0xff]   ;;  %v782_v63 = vld [vmem:[%s1108_s3] ss:$0 sm:$0xff] }
  0x14   : > { %792 = vmatpush3.bf16.msra.mxu0 %v883_v14  ;;  %570 = vmatprep.mubr.bf16.mxu0 %v737_v34 }
  0x15   : > { %814 = vmatpush3.bf16.msra.mxu1 %v884_v15  ;;  %793 = vmatprep.subr.bf16.mxu0 %v885_v16 }
  0x16   : > { %815 = vmatprep.subr.bf16.mxu1 %v886_v17  ;;  %610 = vmatprep.mubr.bf16.mxu1 %v739_v38 }
  0x18   : > { %794 = vmatpush3.bf16.msra.mxu0 %v887_v18 }
  0x19   : > { %816 = vmatpush3.bf16.msra.mxu1 %v888_v19  ;;  %795 = vmatprep.subr.bf16.mxu0 %v889_v20 }
  0x1a   : > { %817 = vmatprep.subr.bf16.mxu1 %v890_v21 }
  0x1c   : > { %796 = vmatpush3.bf16.msra.mxu0 %v891_v22 }
  0x1d   : > { %818 = vmatpush3.bf16.msra.mxu1 %v892_v23  ;;  %797 = vmatprep.subr.bf16.mxu0 %v893_v24 }
  0x1e   : > { %819 = vmatprep.subr.bf16.mxu1 %v894_v25 }
  0x20   : > { %798 = vmatpush3.bf16.msra.mxu0 %v895_v26 }
  0x21   : > { %820 = vmatpush3.bf16.msra.mxu1 %v896_v27  ;;  %799 = vmatprep.subr.bf16.mxu0 %v897_v28 }
  0x22   : > { %821 = vmatprep.subr.bf16.mxu1 %v898_v29 }
  0x24   : > { %800 = vmatpush3.bf16.msra.mxu0 %v899_v30 }
  0x25   : > { %822 = vmatpush3.bf16.msra.mxu1 %v900_v31  ;;  %838 = vmatprep.subr.bf16.mxu0 %v922_v36 }
  0x27   : > { %571 = vmatmul.mubr.bf16.vlgmr.msra.gmra.mrb[0].mxu0 %v736_v33 }
  0x28   : > { %611 = vmatmul.mubr.bf16.vlgmr.msra.gmra.mrb[0].mxu1 %v738_v37  ;;  %839 = vmatpush3.bf16.msra.mxu0 %v906_v39 }
  0x29   : > { %840 = vmatprep.subr.bf16.mxu0 %v922_v36  ;;  %854 = vmatprep.mubr.msk.bf16.mxu0 %vm923_vm0, %v922_v36 }
  0x2c   : > { %841 = vmatpush3.bf16.msra.mxu0 %v907_v40 }
  0x2d   : > { %842 = vmatprep.subr.bf16.mxu0 %v922_v36 }
  0x30   : > { %843 = vmatpush3.bf16.msra.mxu0 %v908_v41 }
  0x31   : > { %844 = vmatprep.subr.bf16.mxu0 %v922_v36 }
  0x34   : > { %845 = vmatpush3.bf16.msra.mxu0 %v909_v42 }
  0x35   : > { %846 = vmatprep.subr.bf16.mxu0 %v922_v36 }
  0x38   : > { %847 = vmatpush3.bf16.msra.mxu0 %v910_v43 }
  0x39   : > { %848 = vmatprep.subr.bf16.mxu0 %v922_v36 }
  0x3c   : > { %849 = vmatpush3.bf16.msra.mxu0 %v911_v44 }
  0x3d   : > { %850 = vmatprep.subr.bf16.mxu0 %v922_v36 }
  0x40   : > { %851 = vmatpush3.bf16.msra.mxu0 %v912_v45 }
  0x41   : > { %852 = vmatprep.subr.bf16.mxu0 %v922_v36 }
  0x44   : > { %853 = vmatpush3.bf16.msra.mxu0 %v913_v46 }
  0x47   : > { %855 = vmatmul.mubr.bf16.vlgmr.msra.gmra.mrb[4].mxu0 %v903_v47 }
  0xfa   : > { %v801_v48 = vpop.f32.mrb[0].mxu0 }
  0xfb   : > { %v823_v49 = vpop.f32.mrb[0].mxu1  ;;  %v802_v50 = vpop.f32.mrb[1].mxu0 }
  0xfc   : > { %v803_v51 = vadd.f32 %v802_v50, %v801_v48  ;;  %v824_v52 = vpop.f32.mrb[1].mxu1  ;;  %v804_v53 = vpop.f32.mrb[2].mxu0 }
  0xfd   : > { %v825_v54 = vadd.f32 %v824_v52, %v823_v49  ;;  %v805_v55 = vpop.f32.mrb[3].mxu0  ;;  %v826_v56 = vpop.f32.mrb[2].mxu1 }
  0xfe   : > { %v827_v57 = vpop.f32.mrb[3].mxu1 }
  0xff   : > { %v613_v58 = vadd.f32 %v825_v54, %v803_v51 }
 0x11a   : > { %v652_v59 = vpop.f32.mrb[4].mxu0 }
 0x11b   : > { %v653_v61 = vadd.f32 %v652_v59, %v613_v58  ;;  %v856_v62 = vpop.f32.mrb[5].mxu0 }
 0x11c   : > { %v655_v0 = vpop.f32.mrb[6].mxu0 }
 0x11d   : > { %v665_v1 = vmul.f32 %v781_v60, %v653_v61  ;;  %v857_v2 = vpop.f32.mrb[7].mxu0 }
 0x11f   : > { %v673_v3 = vadd.f32 %v782_v63, %v665_v1 }
 0x121   : > { %v674_v4 = vmax.f32 %v673_v3, 0.0 }
 0x123   : > { %675 = vst [vmem:[%s195_s10] sm:$0xff] %v674_v4 }
 0x124 PF: > { %s14_s15 = sadd.s32 1, %s920_s15  }
 0x125   : > { %p11_p4 = scmp.ge.s32.totalorder %s14_s15, 4  }
 0x127   :  { %13 = sbr.rel (!%p11_p4) target bundleno = 1 (0x1), region = 66 }

</bundles_post_ra>
